<compile_context>
chip_gen: v5e
topology: v5e:2x2
jax: 0.10.0
libtpu: 0.0.40
codegen_flags: <defaults>
</compile_context>

<pallas_src>
import functools

import jax
import jax.numpy as jnp
from jax import lax
from jax.experimental import pallas as pl
from jax.experimental.pallas import tpu as pltpu

R_MIN = 0.1
R_MAX = 2.0


def _round_up(x, m):
    return ((x + m - 1) // m) * m


def _repulsive_kernel(pos_ref, cell_ref, nbr_ref, off_ref, out_ref, acc_ref, *,
                      bb, n_atoms, n_nbrs, ptile, r_min2, r_max2):
    p_idx = pl.program_id(1)

    # acc_ref is the accumulator across the pair-tile ("arbitrary") grid axis.
    @pl.when(p_idx == 0)
    def _():
        acc_ref[...] = jnp.zeros_like(acc_ref)

    # Central-atom one-hot, shared by all batch rows of this block:
    #   onehot_self[a, p] = 1  iff  a*N <= (global pair index) < (a+1)*N
    # (band test instead of an in-kernel integer divide; batch independent).
    pg = p_idx * ptile + lax.broadcasted_iota(jnp.int32, (1, ptile), 1)      # (1, Pt)
    iota_a = lax.broadcasted_iota(jnp.int32, (n_atoms, ptile), 0)            # (A, Pt)
    a_lo = iota_a * n_nbrs
    onehot_self = ((pg >= a_lo) & (pg < a_lo + n_nbrs)).astype(jnp.float32)  # (A, Pt)

    for i in range(bb):                                    # static unroll, static slices
        pos_t = pos_ref[i]                                 # (3, A)
        cell_t = cell_ref[i]                               # (3, 3) == cell[b]^T
        nbr = nbr_ref[pl.ds(i, 1), :]                      # (1, Pt) int32
        packed = off_ref[pl.ds(i, 1), :]                   # (1, Pt) int32 (3 packed int8)

        # Sign-extend the three packed int8 PBC image counts -> f32 rows.
        ox = jnp.right_shift(jnp.left_shift(packed, 24), 24).astype(jnp.float32)
        oy = jnp.right_shift(jnp.left_shift(packed, 16), 24).astype(jnp.float32)
        oz = jnp.right_shift(jnp.left_shift(packed, 8), 24).astype(jnp.float32)

        onehot_diff = (iota_a == nbr).astype(jnp.float32) - onehot_self      # (A, Pt)
        dvec = jnp.dot(pos_t, onehot_diff, preferred_element_type=jnp.float32)  # (3, Pt)
        # offsets @ cell: columns of cell^T are rows of cell -> 3 broadcast FMAs.
        dvec = (dvec
                + cell_t[:, 0:1] * ox
                + cell_t[:, 1:2] * oy
                + cell_t[:, 2:3] * oz)
        d2 = jnp.sum(dvec * dvec, axis=0, keepdims=True)                     # (1, Pt)

        # Stay in d^2 space: masked/padded pairs have d2 = 0 < r_min^2 -> drop out.
        valid = (d2 >= r_min2) & (d2 <= r_max2)
        f = jnp.where(valid, 1.0 / jnp.where(valid, d2, 1.0), 0.0)
        acc_ref[pl.ds(i, 1), :] = acc_ref[pl.ds(i, 1), :] + f

    # Cross-lane reduction + dense (8,128) store only on the last pair tile.
    @pl.when(p_idx == pl.num_programs(1) - 1)
    def _():
        totals = 0.5 * jnp.sum(acc_ref[...], axis=1, keepdims=True)          # (bb, 1)
        out_ref[...] = jnp.broadcast_to(totals, (1, bb, 128))


def repulsive_prior(positions, neighbors, cell, offsets, mask,
                    r_min=R_MIN, r_max=R_MAX, max_pair_tile=2048):
    """positions (B,A,3) f32, neighbors (B,A,N) int, cell (B,3,3) f32,
    offsets (B,A,N,3) f32 (integer PBC image counts), mask (B,A,N) -> (B,) f32"""
    B, A, _ = positions.shape
    N = neighbors.shape[-1]
    P = A * N
    # TODO(synk): r_min <= 0 (would need the explicit mask stream back) and
    # non-integer / |off| > 127 PBC offsets are not supported by the packed layout.
    assert r_min > 0.0, "masked pairs rely on d=0 < r_min being excluded"

    f32 = jnp.float32
    Bb = 8                                   # dense 8-sublane batch blocks
    Bp = _round_up(B, Bb)
    nb = Bp // Bb

    # Pair tile: as large as possible (cap), bounded so the (A, PTILE) one-hot
    # temporaries stay <= ~1 MiB each (keeps v7x 64 MiB / v5e 16 MiB-default safe).
    P128 = _round_up(P, 128)
    cap = max(128, min(int(max_pair_tile), ((1 << 18) // max(A, 1)) // 128 * 128))
    PTILE = P128 if P128 <= cap else cap
    Ppad = _round_up(P, PTILE)
    npt = Ppad // PTILE

    pos_t = jnp.transpose(positions.astype(f32), (0, 2, 1))           # (B, 3, A)
    cell_t = jnp.transpose(cell.astype(f32), (0, 2, 1))               # (B, 3, 3) = cell^T
    nbr = neighbors.astype(jnp.int32).reshape(B, P)                   # (B, P)

    # Pack the 3 small-integer PBC offsets into one int32/pair (4 B instead of 12).
    oi = jnp.round(offsets.astype(f32)).astype(jnp.int32).reshape(B, P, 3)
    packed = ((oi[..., 0] & 0xFF)
              | ((oi[..., 1] & 0xFF) << 8)
              | ((oi[..., 2] & 0xFF) << 16))                          # (B, P) int32

    # Fold the mask in: masked pairs become self-pairs with zero offset -> d = 0.
    self_idx = (jnp.arange(P, dtype=jnp.int32) // N)[None, :]
    mask_b = mask.reshape(B, P) != 0
    nbr = jnp.where(mask_b, nbr, self_idx)
    packed = jnp.where(mask_b, packed, 0)

    # Padding: padded pairs get neighbor index A (out of range -> zero one-hot)
    # and zero offsets, so they contribute 0; padded batch rows are discarded.
    nbr = jnp.pad(nbr, ((0, Bp - B), (0, Ppad - P)), constant_values=A)
    packed = jnp.pad(packed, ((0, Bp - B), (0, Ppad - P)))
    pos_t = jnp.pad(pos_t, ((0, Bp - B), (0, 0), (0, 0)))
    cell_t = jnp.pad(cell_t, ((0, Bp - B), (0, 0), (0, 0)))

    kernel = functools.partial(
        _repulsive_kernel, bb=Bb, n_atoms=A, n_nbrs=N, ptile=PTILE,
        r_min2=float(r_min) ** 2, r_max2=float(r_max) ** 2)

    out = pl.pallas_call(
        kernel,
        out_shape=jax.ShapeDtypeStruct((nb, Bb, 128), jnp.float32),
        grid=(nb, npt),
        in_specs=[
            pl.BlockSpec((Bb, 3, A), lambda b, p: (b, 0, 0)),   # positions^T (resident over p)
            pl.BlockSpec((Bb, 3, 3), lambda b, p: (b, 0, 0)),   # cell^T      (resident over p)
            pl.BlockSpec((Bb, PTILE), lambda b, p: (b, p)),     # neighbors   (dense 8-sublane)
            pl.BlockSpec((Bb, PTILE), lambda b, p: (b, p)),     # packed offsets (dense)
        ],
        out_specs=pl.BlockSpec((1, Bb, 128), lambda b, p: (b, 0, 0)),
        scratch_shapes=[pltpu.VMEM((Bb, PTILE), jnp.float32)],
        compiler_params=pltpu.CompilerParams(
            dimension_semantics=("parallel", "arbitrary"),
            vmem_limit_bytes=32 * 1024 * 1024),
    )(pos_t, cell_t, nbr, packed)

    # Row i of batch block b holds the result for batch element b*Bb + i.
    return out[:, :, 0].reshape(-1)[:B]


def repulsive_prior_ref(positions, neighbors, cell, offsets, mask,
                        r_min=R_MIN, r_max=R_MAX):
    """Pure-JAX reference mirroring the PyTorch forward."""
    B = positions.shape[0]
    idx_b = jnp.arange(B)[:, None, None]
    gathered = positions[idx_b, neighbors]                    # (B, A, N, 3)
    dvec = gathered - positions[:, :, None, :]
    off_cart = jnp.einsum('bank,bkd->band', offsets, cell)
    dvec = dvec + off_cart
    d = jnp.sqrt(jnp.sum(dvec * dvec, axis=-1))
    d = jnp.where(mask != 0.0, d, 0.0)
    valid = (d >= r_min) & (d <= r_max)
    f = jnp.where(valid, 1.0 / jnp.where(valid, d * d, 1.0), 0.0)
    return jnp.sum(f, axis=(1, 2)) / 2.0


if __name__ == "__main__":
    def run_case(key, B, A, N, **kw):
        k1, k2, k3, k4, k5 = jax.random.split(key, 5)
        positions = jax.random.uniform(k1, (B, A, 3), jnp.float32, 0.0, 1.5)
        cell = (jnp.tile(jnp.eye(3, dtype=jnp.float32)[None] * 2.0, (B, 1, 1))
                + 0.05 * jax.random.normal(k5, (B, 3, 3), jnp.float32))
        neighbors = jax.random.randint(k2, (B, A, N), 0, A, jnp.int32)
        offsets = jax.random.randint(k3, (B, A, N, 3), -1, 2).astype(jnp.float32)
        mask = (jax.random.uniform(k4, (B, A, N)) > 0.2).astype(jnp.float32)

        out = jax.block_until_ready(
            repulsive_prior(positions, neighbors, cell, offsets, mask, **kw))
        ref = repulsive_prior_ref(positions, neighbors, cell, offsets, mask)
        assert out.shape == (B,), out.shape
        assert jnp.allclose(out, ref, rtol=5e-4, atol=1e-3), (out, ref)

    key = jax.random.PRNGKey(0)
    ka, kb, kc = jax.random.split(key, 3)
    run_case(ka, B=2, A=8, N=6)                        # single pair tile, single batch block
    run_case(kb, B=9, A=16, N=40)                      # batch padding + two batch blocks
    run_case(kc, B=3, A=16, N=40, max_pair_tile=256)   # multi pair-tile accumulation + pair padding
    print("KERNEL_OK")
</pallas_src>

<mosaic_0001>
module attributes {stable_mosaic.version = 11 : i64} {
  func.func @_repulsive_kernel(%arg0: i32, %arg1: i32, %arg2: memref<8x3x8xf32, #tpu.memory_space<vmem>>, %arg3: memref<8x3x3xf32, #tpu.memory_space<vmem>>, %arg4: memref<8x128xi32, #tpu.memory_space<vmem>>, %arg5: memref<8x128xi32, #tpu.memory_space<vmem>>, %arg6: memref<1x8x128xf32, #tpu.memory_space<vmem>>, %arg7: memref<8x128xf32, #tpu.memory_space<vmem>>) attributes {dimension_semantics = [#tpu.dimension_semantics<parallel>, #tpu.dimension_semantics<arbitrary>], iteration_bounds = array<i64: 1, 1>, scalar_prefetch = 0 : i64, scratch_operands = 1 : i64, tpu.core_type = #tpu.core_type<tc>, window_params = [{transform_indices = @transform_0, window_bounds = array<i64: 8, 3, 8>}, {transform_indices = @transform_1, window_bounds = array<i64: 8, 3, 3>}, {transform_indices = @transform_2, window_bounds = array<i64: 8, 128>}, {transform_indices = @transform_3, window_bounds = array<i64: 8, 128>}, {transform_indices = @transform_4, window_bounds = array<i64: 1, 8, 128>}]} {
    %c0_i32 = arith.constant 0 : i32
    %0 = arith.cmpi eq, %arg1, %c0_i32 : i32
    %1 = arith.extui %0 : i1 to i32
    %c0_i32_0 = arith.constant 0 : i32
    %2 = arith.cmpi ne, %1, %c0_i32_0 : i32
    scf.if %2 {
      %cst_208 = arith.constant 0.000000e+00 : f32
      %494 = vector.broadcast %cst_208 : f32 to vector<8x128xf32>
      %c0_209 = arith.constant 0 : index
      %c0_210 = arith.constant 0 : index
      %495 = vector.load %arg7[%c0_209, %c0_210] : memref<8x128xf32, #tpu.memory_space<vmem>>, vector<8x128xf32>
      tpu.vector_store %arg7[%c0_209, %c0_210], %494 {strides = array<i32>} : memref<8x128xf32, #tpu.memory_space<vmem>>, vector<8x128xf32>,
    } else {
    }
    %c128_i32 = arith.constant 128 : i32
    %3 = arith.muli %arg1, %c128_i32 : i32
    %4 = tpu.iota {dimensions = array<i32: 1>} : vector<1x128xi32>
    %5 = vector.broadcast %3 : i32 to vector<1x128xi32>
    %6 = arith.addi %5, %4 : vector<1x128xi32>
    %7 = tpu.iota {dimensions = array<i32: 0>} : vector<8x128xi32>
    %c6_i32 = arith.constant 6 : i32
    %8 = vector.broadcast %c6_i32 : i32 to vector<8x128xi32>
    %9 = arith.muli %7, %8 : vector<8x128xi32>
    %10 = vector.broadcast %6 : vector<1x128xi32> to vector<8x128xi32>
    %11 = arith.cmpi sge, %10, %9 : vector<8x128xi32>
    %c6_i32_1 = arith.constant 6 : i32
    %12 = vector.broadcast %c6_i32_1 : i32 to vector<8x128xi32>
    %13 = arith.addi %9, %12 : vector<8x128xi32>
    %14 = vector.broadcast %6 : vector<1x128xi32> to vector<8x128xi32>
    %15 = arith.cmpi slt, %14, %13 : vector<8x128xi32>
    %16 = arith.andi %11, %15 : vector<8x128xi1>
    %17 = arith.extui %16 : vector<8x128xi1> to vector<8x128xi32>
    %18 = arith.sitofp %17 : vector<8x128xi32> to vector<8x128xf32>
    %c0 = arith.constant 0 : index
    %c0_2 = arith.constant 0 : index
    %c0_3 = arith.constant 0 : index
    %19 = vector.load %arg2[%c0, %c0_2, %c0_3] : memref<8x3x8xf32, #tpu.memory_space<vmem>>, vector<1x3x8xf32>
    %20 = vector.shape_cast %19 : vector<1x3x8xf32> to vector<3x8xf32>
    %c0_4 = arith.constant 0 : index
    %c0_5 = arith.constant 0 : index
    %c0_6 = arith.constant 0 : index
    %21 = vector.load %arg3[%c0_4, %c0_5, %c0_6] : memref<8x3x3xf32, #tpu.memory_space<vmem>>, vector<1x3x3xf32>
    %22 = vector.shape_cast %21 : vector<1x3x3xf32> to vector<3x3xf32>
    %c0_7 = arith.constant 0 : index
    %c0_8 = arith.constant 0 : index
    %23 = vector.load %arg4[%c0_7, %c0_8] : memref<8x128xi32, #tpu.memory_space<vmem>>, vector<1x128xi32>
    %c0_9 = arith.constant 0 : index
    %c0_10 = arith.constant 0 : index
    %24 = vector.load %arg5[%c0_9, %c0_10] : memref<8x128xi32, #tpu.memory_space<vmem>>, vector<1x128xi32>
    %c24_i32 = arith.constant 24 : i32
    %25 = vector.broadcast %c24_i32 : i32 to vector<1x128xi32>
    %26 = arith.shli %24, %25 : vector<1x128xi32>
    %c24_i32_11 = arith.constant 24 : i32
    %27 = vector.broadcast %c24_i32_11 : i32 to vector<1x128xi32>
    %28 = arith.shrsi %26, %27 : vector<1x128xi32>
    %29 = arith.sitofp %28 : vector<1x128xi32> to vector<1x128xf32>
    %c16_i32 = arith.constant 16 : i32
    %30 = vector.broadcast %c16_i32 : i32 to vector<1x128xi32>
    %31 = arith.shli %24, %30 : vector<1x128xi32>
    %c24_i32_12 = arith.constant 24 : i32
    %32 = vector.broadcast %c24_i32_12 : i32 to vector<1x128xi32>
    %33 = arith.shrsi %31, %32 : vector<1x128xi32>
    %34 = arith.sitofp %33 : vector<1x128xi32> to vector<1x128xf32>
    %c8_i32 = arith.constant 8 : i32
    %35 = vector.broadcast %c8_i32 : i32 to vector<1x128xi32>
    %36 = arith.shli %24, %35 : vector<1x128xi32>
    %c24_i32_13 = arith.constant 24 : i32
    %37 = vector.broadcast %c24_i32_13 : i32 to vector<1x128xi32>
    %38 = arith.shrsi %36, %37 : vector<1x128xi32>
    %39 = arith.sitofp %38 : vector<1x128xi32> to vector<1x128xf32>
    %40 = vector.broadcast %23 : vector<1x128xi32> to vector<8x128xi32>
    %41 = arith.cmpi eq, %7, %40 : vector<8x128xi32>
    %42 = arith.extui %41 : vector<8x128xi1> to vector<8x128xi32>
    %43 = arith.sitofp %42 : vector<8x128xi32> to vector<8x128xf32>
    %44 = arith.subf %43, %18 : vector<8x128xf32>
    %cst = arith.constant dense<0.000000e+00> : vector<3x128xf32>
    %45 = tpu.matmul %20, %44, %cst {dimension_numbers = #tpu.dot_dimension_numbers<[1], [0], [0], [1], [0, 0, 1, 1], [], []>} : vector<3x8xf32>, vector<8x128xf32>, vector<3x128xf32> -> vector<3x128xf32>
    %46 = vector.extract_strided_slice %22 {offsets = [0, 0], sizes = [3, 1], strides = [1, 1]} : vector<3x3xf32> to vector<3x1xf32>
    %47 = vector.broadcast %46 : vector<3x1xf32> to vector<3x128xf32>
    %48 = vector.broadcast %29 : vector<1x128xf32> to vector<3x128xf32>
    %49 = arith.mulf %47, %48 : vector<3x128xf32>
    %50 = arith.addf %45, %49 : vector<3x128xf32>
    %51 = vector.extract_strided_slice %22 {offsets = [0, 1], sizes = [3, 1], strides = [1, 1]} : vector<3x3xf32> to vector<3x1xf32>
    %52 = vector.broadcast %51 : vector<3x1xf32> to vector<3x128xf32>
    %53 = vector.broadcast %34 : vector<1x128xf32> to vector<3x128xf32>
    %54 = arith.mulf %52, %53 : vector<3x128xf32>
    %55 = arith.addf %50, %54 : vector<3x128xf32>
    %56 = vector.extract_strided_slice %22 {offsets = [0, 2], sizes = [3, 1], strides = [1, 1]} : vector<3x3xf32> to vector<3x1xf32>
    %57 = vector.broadcast %56 : vector<3x1xf32> to vector<3x128xf32>
    %58 = vector.broadcast %39 : vector<1x128xf32> to vector<3x128xf32>
    %59 = arith.mulf %57, %58 : vector<3x128xf32>
    %60 = arith.addf %55, %59 : vector<3x128xf32>
    %61 = arith.mulf %60, %60 : vector<3x128xf32>
    %cst_14 = arith.constant dense<0.000000e+00> : vector<128xf32>
    %62 = vector.multi_reduction <add>, %61, %cst_14 [0] : vector<3x128xf32> to vector<128xf32>
    %63 = vector.shape_cast %62 : vector<128xf32> to vector<1x128xf32>
    %cst_15 = arith.constant 0.00999999977 : f32
    %64 = vector.broadcast %cst_15 : f32 to vector<1x128xf32>
    %65 = arith.cmpf oge, %63, %64 : vector<1x128xf32>
    %cst_16 = arith.constant 4.000000e+00 : f32
    %66 = vector.broadcast %cst_16 : f32 to vector<1x128xf32>
    %67 = arith.cmpf ole, %63, %66 : vector<1x128xf32>
    %68 = arith.andi %65, %67 : vector<1x128xi1>
    %cst_17 = arith.constant 1.000000e+00 : f32
    %69 = vector.broadcast %cst_17 : f32 to vector<1x128xf32>
    %70 = arith.select %68, %63, %69 : vector<1x128xi1>, vector<1x128xf32>
    %cst_18 = arith.constant 1.000000e+00 : f32
    %71 = vector.broadcast %cst_18 : f32 to vector<1x128xf32>
    %72 = arith.divf %71, %70 : vector<1x128xf32>
    %cst_19 = arith.constant 0.000000e+00 : f32
    %73 = vector.broadcast %cst_19 : f32 to vector<1x128xf32>
    %74 = arith.select %68, %72, %73 : vector<1x128xi1>, vector<1x128xf32>
    %c0_20 = arith.constant 0 : index
    %c0_21 = arith.constant 0 : index
    %75 = vector.load %arg7[%c0_20, %c0_21] : memref<8x128xf32, #tpu.memory_space<vmem>>, vector<1x128xf32>
    %76 = arith.addf %75, %74 : vector<1x128xf32>
    %c0_22 = arith.constant 0 : index
    %c0_23 = arith.constant 0 : index
    %77 = vector.load %arg7[%c0_22, %c0_23] : memref<8x128xf32, #tpu.memory_space<vmem>>, vector<1x128xf32>
    tpu.vector_store %arg7[%c0_22, %c0_23], %76 {strides = array<i32>} : memref<8x128xf32, #tpu.memory_space<vmem>>, vector<1x128xf32>,
    %c1 = arith.constant 1 : index
    %c0_24 = arith.constant 0 : index
    %c0_25 = arith.constant 0 : index
    %78 = vector.load %arg2[%c1, %c0_24, %c0_25] : memref<8x3x8xf32, #tpu.memory_space<vmem>>, vector<1x3x8xf32>
    %79 = vector.shape_cast %78 : vector<1x3x8xf32> to vector<3x8xf32>
    %c1_26 = arith.constant 1 : index
    %c0_27 = arith.constant 0 : index
    %c0_28 = arith.constant 0 : index
    %80 = vector.load %arg3[%c1_26, %c0_27, %c0_28] : memref<8x3x3xf32, #tpu.memory_space<vmem>>, vector<1x3x3xf32>
    %81 = vector.shape_cast %80 : vector<1x3x3xf32> to vector<3x3xf32>
    %c1_29 = arith.constant 1 : index
    %c0_30 = arith.constant 0 : index
    %82 = vector.load %arg4[%c1_29, %c0_30] : memref<8x128xi32, #tpu.memory_space<vmem>>, vector<1x128xi32>
    %c1_31 = arith.constant 1 : index
    %c0_32 = arith.constant 0 : index
    %83 = vector.load %arg5[%c1_31, %c0_32] : memref<8x128xi32, #tpu.memory_space<vmem>>, vector<1x128xi32>
    %c24_i32_33 = arith.constant 24 : i32
    %84 = vector.broadcast %c24_i32_33 : i32 to vector<1x128xi32>
    %85 = arith.shli %83, %84 : vector<1x128xi32>
    %c24_i32_34 = arith.constant 24 : i32
    %86 = vector.broadcast %c24_i32_34 : i32 to vector<1x128xi32>
    %87 = arith.shrsi %85, %86 : vector<1x128xi32>
    %88 = arith.sitofp %87 : vector<1x128xi32> to vector<1x128xf32>
    %c16_i32_35 = arith.constant 16 : i32
    %89 = vector.broadcast %c16_i32_35 : i32 to vector<1x128xi32>
    %90 = arith.shli %83, %89 : vector<1x128xi32>
    %c24_i32_36 = arith.constant 24 : i32
    %91 = vector.broadcast %c24_i32_36 : i32 to vector<1x128xi32>
    %92 = arith.shrsi %90, %91 : vector<1x128xi32>
    %93 = arith.sitofp %92 : vector<1x128xi32> to vector<1x128xf32>
    %c8_i32_37 = arith.constant 8 : i32
    %94 = vector.broadcast %c8_i32_37 : i32 to vector<1x128xi32>
    %95 = arith.shli %83, %94 : vector<1x128xi32>
    %c24_i32_38 = arith.constant 24 : i32
    %96 = vector.broadcast %c24_i32_38 : i32 to vector<1x128xi32>
    %97 = arith.shrsi %95, %96 : vector<1x128xi32>
    %98 = arith.sitofp %97 : vector<1x128xi32> to vector<1x128xf32>
    %99 = vector.broadcast %82 : vector<1x128xi32> to vector<8x128xi32>
    %100 = arith.cmpi eq, %7, %99 : vector<8x128xi32>
    %101 = arith.extui %100 : vector<8x128xi1> to vector<8x128xi32>
    %102 = arith.sitofp %101 : vector<8x128xi32> to vector<8x128xf32>
    %103 = arith.subf %102, %18 : vector<8x128xf32>
    %cst_39 = arith.constant dense<0.000000e+00> : vector<3x128xf32>
    %104 = tpu.matmul %79, %103, %cst_39 {dimension_numbers = #tpu.dot_dimension_numbers<[1], [0], [0], [1], [0, 0, 1, 1], [], []>} : vector<3x8xf32>, vector<8x128xf32>, vector<3x128xf32> -> vector<3x128xf32>
    %105 = vector.extract_strided_slice %81 {offsets = [0, 0], sizes = [3, 1], strides = [1, 1]} : vector<3x3xf32> to vector<3x1xf32>
    %106 = vector.broadcast %105 : vector<3x1xf32> to vector<3x128xf32>
    %107 = vector.broadcast %88 : vector<1x128xf32> to vector<3x128xf32>
    %108 = arith.mulf %106, %107 : vector<3x128xf32>
    %109 = arith.addf %104, %108 : vector<3x128xf32>
    %110 = vector.extract_strided_slice %81 {offsets = [0, 1], sizes = [3, 1], strides = [1, 1]} : vector<3x3xf32> to vector<3x1xf32>
    %111 = vector.broadcast %110 : vector<3x1xf32> to vector<3x128xf32>
    %112 = vector.broadcast %93 : vector<1x128xf32> to vector<3x128xf32>
    %113 = arith.mulf %111, %112 : vector<3x128xf32>
    %114 = arith.addf %109, %113 : vector<3x128xf32>
    %115 = vector.extract_strided_slice %81 {offsets = [0, 2], sizes = [3, 1], strides = [1, 1]} : vector<3x3xf32> to vector<3x1xf32>
    %116 = vector.broadcast %115 : vector<3x1xf32> to vector<3x128xf32>
    %117 = vector.broadcast %98 : vector<1x128xf32> to vector<3x128xf32>
    %118 = arith.mulf %116, %117 : vector<3x128xf32>
    %119 = arith.addf %114, %118 : vector<3x128xf32>
    %120 = arith.mulf %119, %119 : vector<3x128xf32>
    %cst_40 = arith.constant dense<0.000000e+00> : vector<128xf32>
    %121 = vector.multi_reduction <add>, %120, %cst_40 [0] : vector<3x128xf32> to vector<128xf32>
    %122 = vector.shape_cast %121 : vector<128xf32> to vector<1x128xf32>
    %cst_41 = arith.constant 0.00999999977 : f32
    %123 = vector.broadcast %cst_41 : f32 to vector<1x128xf32>
    %124 = arith.cmpf oge, %122, %123 : vector<1x128xf32>
    %cst_42 = arith.constant 4.000000e+00 : f32
    %125 = vector.broadcast %cst_42 : f32 to vector<1x128xf32>
    %126 = arith.cmpf ole, %122, %125 : vector<1x128xf32>
    %127 = arith.andi %124, %126 : vector<1x128xi1>
    %cst_43 = arith.constant 1.000000e+00 : f32
    %128 = vector.broadcast %cst_43 : f32 to vector<1x128xf32>
    %129 = arith.select %127, %122, %128 : vector<1x128xi1>, vector<1x128xf32>
    %cst_44 = arith.constant 1.000000e+00 : f32
    %130 = vector.broadcast %cst_44 : f32 to vector<1x128xf32>
    %131 = arith.divf %130, %129 : vector<1x128xf32>
    %cst_45 = arith.constant 0.000000e+00 : f32
    %132 = vector.broadcast %cst_45 : f32 to vector<1x128xf32>
    %133 = arith.select %127, %131, %132 : vector<1x128xi1>, vector<1x128xf32>
    %c1_46 = arith.constant 1 : index
    %c0_47 = arith.constant 0 : index
    %134 = vector.load %arg7[%c1_46, %c0_47] : memref<8x128xf32, #tpu.memory_space<vmem>>, vector<1x128xf32>
    %135 = arith.addf %134, %133 : vector<1x128xf32>
    %c1_48 = arith.constant 1 : index
    %c0_49 = arith.constant 0 : index
    %136 = vector.load %arg7[%c1_48, %c0_49] : memref<8x128xf32, #tpu.memory_space<vmem>>, vector<1x128xf32>
    tpu.vector_store %arg7[%c1_48, %c0_49], %135 {strides = array<i32>} : memref<8x128xf32, #tpu.memory_space<vmem>>, vector<1x128xf32>,
    %c2 = arith.constant 2 : index
    %c0_50 = arith.constant 0 : index
    %c0_51 = arith.constant 0 : index
    %137 = vector.load %arg2[%c2, %c0_50, %c0_51] : memref<8x3x8xf32, #tpu.memory_space<vmem>>, vector<1x3x8xf32>
    %138 = vector.shape_cast %137 : vector<1x3x8xf32> to vector<3x8xf32>
    %c2_52 = arith.constant 2 : index
    %c0_53 = arith.constant 0 : index
    %c0_54 = arith.constant 0 : index
    %139 = vector.load %arg3[%c2_52, %c0_53, %c0_54] : memref<8x3x3xf32, #tpu.memory_space<vmem>>, vector<1x3x3xf32>
    %140 = vector.shape_cast %139 : vector<1x3x3xf32> to vector<3x3xf32>
    %c2_55 = arith.constant 2 : index
    %c0_56 = arith.constant 0 : index
    %141 = vector.load %arg4[%c2_55, %c0_56] : memref<8x128xi32, #tpu.memory_space<vmem>>, vector<1x128xi32>
    %c2_57 = arith.constant 2 : index
    %c0_58 = arith.constant 0 : index
    %142 = vector.load %arg5[%c2_57, %c0_58] : memref<8x128xi32, #tpu.memory_space<vmem>>, vector<1x128xi32>
    %c24_i32_59 = arith.constant 24 : i32
    %143 = vector.broadcast %c24_i32_59 : i32 to vector<1x128xi32>
    %144 = arith.shli %142, %143 : vector<1x128xi32>
    %c24_i32_60 = arith.constant 24 : i32
    %145 = vector.broadcast %c24_i32_60 : i32 to vector<1x128xi32>
    %146 = arith.shrsi %144, %145 : vector<1x128xi32>
    %147 = arith.sitofp %146 : vector<1x128xi32> to vector<1x128xf32>
    %c16_i32_61 = arith.constant 16 : i32
    %148 = vector.broadcast %c16_i32_61 : i32 to vector<1x128xi32>
    %149 = arith.shli %142, %148 : vector<1x128xi32>
    %c24_i32_62 = arith.constant 24 : i32
    %150 = vector.broadcast %c24_i32_62 : i32 to vector<1x128xi32>
    %151 = arith.shrsi %149, %150 : vector<1x128xi32>
    %152 = arith.sitofp %151 : vector<1x128xi32> to vector<1x128xf32>
    %c8_i32_63 = arith.constant 8 : i32
    %153 = vector.broadcast %c8_i32_63 : i32 to vector<1x128xi32>
    %154 = arith.shli %142, %153 : vector<1x128xi32>
    %c24_i32_64 = arith.constant 24 : i32
    %155 = vector.broadcast %c24_i32_64 : i32 to vector<1x128xi32>
    %156 = arith.shrsi %154, %155 : vector<1x128xi32>
    %157 = arith.sitofp %156 : vector<1x128xi32> to vector<1x128xf32>
    %158 = vector.broadcast %141 : vector<1x128xi32> to vector<8x128xi32>
    %159 = arith.cmpi eq, %7, %158 : vector<8x128xi32>
    %160 = arith.extui %159 : vector<8x128xi1> to vector<8x128xi32>
    %161 = arith.sitofp %160 : vector<8x128xi32> to vector<8x128xf32>
    %162 = arith.subf %161, %18 : vector<8x128xf32>
    %cst_65 = arith.constant dense<0.000000e+00> : vector<3x128xf32>
    %163 = tpu.matmul %138, %162, %cst_65 {dimension_numbers = #tpu.dot_dimension_numbers<[1], [0], [0], [1], [0, 0, 1, 1], [], []>} : vector<3x8xf32>, vector<8x128xf32>, vector<3x128xf32> -> vector<3x128xf32>
    %164 = vector.extract_strided_slice %140 {offsets = [0, 0], sizes = [3, 1], strides = [1, 1]} : vector<3x3xf32> to vector<3x1xf32>
    %165 = vector.broadcast %164 : vector<3x1xf32> to vector<3x128xf32>
    %166 = vector.broadcast %147 : vector<1x128xf32> to vector<3x128xf32>
    %167 = arith.mulf %165, %166 : vector<3x128xf32>
    %168 = arith.addf %163, %167 : vector<3x128xf32>
    %169 = vector.extract_strided_slice %140 {offsets = [0, 1], sizes = [3, 1], strides = [1, 1]} : vector<3x3xf32> to vector<3x1xf32>
    %170 = vector.broadcast %169 : vector<3x1xf32> to vector<3x128xf32>
    %171 = vector.broadcast %152 : vector<1x128xf32> to vector<3x128xf32>
    %172 = arith.mulf %170, %171 : vector<3x128xf32>
    %173 = arith.addf %168, %172 : vector<3x128xf32>
    %174 = vector.extract_strided_slice %140 {offsets = [0, 2], sizes = [3, 1], strides = [1, 1]} : vector<3x3xf32> to vector<3x1xf32>
    %175 = vector.broadcast %174 : vector<3x1xf32> to vector<3x128xf32>
    %176 = vector.broadcast %157 : vector<1x128xf32> to vector<3x128xf32>
    %177 = arith.mulf %175, %176 : vector<3x128xf32>
    %178 = arith.addf %173, %177 : vector<3x128xf32>
    %179 = arith.mulf %178, %178 : vector<3x128xf32>
    %cst_66 = arith.constant dense<0.000000e+00> : vector<128xf32>
    %180 = vector.multi_reduction <add>, %179, %cst_66 [0] : vector<3x128xf32> to vector<128xf32>
    %181 = vector.shape_cast %180 : vector<128xf32> to vector<1x128xf32>
    %cst_67 = arith.constant 0.00999999977 : f32
    %182 = vector.broadcast %cst_67 : f32 to vector<1x128xf32>
    %183 = arith.cmpf oge, %181, %182 : vector<1x128xf32>
    %cst_68 = arith.constant 4.000000e+00 : f32
    %184 = vector.broadcast %cst_68 : f32 to vector<1x128xf32>
    %185 = arith.cmpf ole, %181, %184 : vector<1x128xf32>
    %186 = arith.andi %183, %185 : vector<1x128xi1>
    %cst_69 = arith.constant 1.000000e+00 : f32
    %187 = vector.broadcast %cst_69 : f32 to vector<1x128xf32>
    %188 = arith.select %186, %181, %187 : vector<1x128xi1>, vector<1x128xf32>
    %cst_70 = arith.constant 1.000000e+00 : f32
    %189 = vector.broadcast %cst_70 : f32 to vector<1x128xf32>
    %190 = arith.divf %189, %188 : vector<1x128xf32>
    %cst_71 = arith.constant 0.000000e+00 : f32
    %191 = vector.broadcast %cst_71 : f32 to vector<1x128xf32>
    %192 = arith.select %186, %190, %191 : vector<1x128xi1>, vector<1x128xf32>
    %c2_72 = arith.constant 2 : index
    %c0_73 = arith.constant 0 : index
    %193 = vector.load %arg7[%c2_72, %c0_73] : memref<8x128xf32, #tpu.memory_space<vmem>>, vector<1x128xf32>
    %194 = arith.addf %193, %192 : vector<1x128xf32>
    %c2_74 = arith.constant 2 : index
    %c0_75 = arith.constant 0 : index
    %195 = vector.load %arg7[%c2_74, %c0_75] : memref<8x128xf32, #tpu.memory_space<vmem>>, vector<1x128xf32>
    tpu.vector_store %arg7[%c2_74, %c0_75], %194 {strides = array<i32>} : memref<8x128xf32, #tpu.memory_space<vmem>>, vector<1x128xf32>,
    %c3 = arith.constant 3 : index
    %c0_76 = arith.constant 0 : index
    %c0_77 = arith.constant 0 : index
    %196 = vector.load %arg2[%c3, %c0_76, %c0_77] : memref<8x3x8xf32, #tpu.memory_space<vmem>>, vector<1x3x8xf32>
    %197 = vector.shape_cast %196 : vector<1x3x8xf32> to vector<3x8xf32>
    %c3_78 = arith.constant 3 : index
    %c0_79 = arith.constant 0 : index
    %c0_80 = arith.constant 0 : index
    %198 = vector.load %arg3[%c3_78, %c0_79, %c0_80] : memref<8x3x3xf32, #tpu.memory_space<vmem>>, vector<1x3x3xf32>
    %199 = vector.shape_cast %198 : vector<1x3x3xf32> to vector<3x3xf32>
    %c3_81 = arith.constant 3 : index
    %c0_82 = arith.constant 0 : index
    %200 = vector.load %arg4[%c3_81, %c0_82] : memref<8x128xi32, #tpu.memory_space<vmem>>, vector<1x128xi32>
    %c3_83 = arith.constant 3 : index
    %c0_84 = arith.constant 0 : index
    %201 = vector.load %arg5[%c3_83, %c0_84] : memref<8x128xi32, #tpu.memory_space<vmem>>, vector<1x128xi32>
    %c24_i32_85 = arith.constant 24 : i32
    %202 = vector.broadcast %c24_i32_85 : i32 to vector<1x128xi32>
    %203 = arith.shli %201, %202 : vector<1x128xi32>
    %c24_i32_86 = arith.constant 24 : i32
    %204 = vector.broadcast %c24_i32_86 : i32 to vector<1x128xi32>
    %205 = arith.shrsi %203, %204 : vector<1x128xi32>
    %206 = arith.sitofp %205 : vector<1x128xi32> to vector<1x128xf32>
    %c16_i32_87 = arith.constant 16 : i32
    %207 = vector.broadcast %c16_i32_87 : i32 to vector<1x128xi32>
    %208 = arith.shli %201, %207 : vector<1x128xi32>
    %c24_i32_88 = arith.constant 24 : i32
    %209 = vector.broadcast %c24_i32_88 : i32 to vector<1x128xi32>
    %210 = arith.shrsi %208, %209 : vector<1x128xi32>
    %211 = arith.sitofp %210 : vector<1x128xi32> to vector<1x128xf32>
    %c8_i32_89 = arith.constant 8 : i32
    %212 = vector.broadcast %c8_i32_89 : i32 to vector<1x128xi32>
    %213 = arith.shli %201, %212 : vector<1x128xi32>
    %c24_i32_90 = arith.constant 24 : i32
    %214 = vector.broadcast %c24_i32_90 : i32 to vector<1x128xi32>
    %215 = arith.shrsi %213, %214 : vector<1x128xi32>
    %216 = arith.sitofp %215 : vector<1x128xi32> to vector<1x128xf32>
    %217 = vector.broadcast %200 : vector<1x128xi32> to vector<8x128xi32>
    %218 = arith.cmpi eq, %7, %217 : vector<8x128xi32>
    %219 = arith.extui %218 : vector<8x128xi1> to vector<8x128xi32>
    %220 = arith.sitofp %219 : vector<8x128xi32> to vector<8x128xf32>
    %221 = arith.subf %220, %18 : vector<8x128xf32>
    %cst_91 = arith.constant dense<0.000000e+00> : vector<3x128xf32>
    %222 = tpu.matmul %197, %221, %cst_91 {dimension_numbers = #tpu.dot_dimension_numbers<[1], [0], [0], [1], [0, 0, 1, 1], [], []>} : vector<3x8xf32>, vector<8x128xf32>, vector<3x128xf32> -> vector<3x128xf32>
    %223 = vector.extract_strided_slice %199 {offsets = [0, 0], sizes = [3, 1], strides = [1, 1]} : vector<3x3xf32> to vector<3x1xf32>
    %224 = vector.broadcast %223 : vector<3x1xf32> to vector<3x128xf32>
    %225 = vector.broadcast %206 : vector<1x128xf32> to vector<3x128xf32>
    %226 = arith.mulf %224, %225 : vector<3x128xf32>
    %227 = arith.addf %222, %226 : vector<3x128xf32>
    %228 = vector.extract_strided_slice %199 {offsets = [0, 1], sizes = [3, 1], strides = [1, 1]} : vector<3x3xf32> to vector<3x1xf32>
    %229 = vector.broadcast %228 : vector<3x1xf32> to vector<3x128xf32>
    %230 = vector.broadcast %211 : vector<1x128xf32> to vector<3x128xf32>
    %231 = arith.mulf %229, %230 : vector<3x128xf32>
    %232 = arith.addf %227, %231 : vector<3x128xf32>
    %233 = vector.extract_strided_slice %199 {offsets = [0, 2], sizes = [3, 1], strides = [1, 1]} : vector<3x3xf32> to vector<3x1xf32>
    %234 = vector.broadcast %233 : vector<3x1xf32> to vector<3x128xf32>
    %235 = vector.broadcast %216 : vector<1x128xf32> to vector<3x128xf32>
    %236 = arith.mulf %234, %235 : vector<3x128xf32>
    %237 = arith.addf %232, %236 : vector<3x128xf32>
    %238 = arith.mulf %237, %237 : vector<3x128xf32>
    %cst_92 = arith.constant dense<0.000000e+00> : vector<128xf32>
    %239 = vector.multi_reduction <add>, %238, %cst_92 [0] : vector<3x128xf32> to vector<128xf32>
    %240 = vector.shape_cast %239 : vector<128xf32> to vector<1x128xf32>
    %cst_93 = arith.constant 0.00999999977 : f32
    %241 = vector.broadcast %cst_93 : f32 to vector<1x128xf32>
    %242 = arith.cmpf oge, %240, %241 : vector<1x128xf32>
    %cst_94 = arith.constant 4.000000e+00 : f32
    %243 = vector.broadcast %cst_94 : f32 to vector<1x128xf32>
    %244 = arith.cmpf ole, %240, %243 : vector<1x128xf32>
    %245 = arith.andi %242, %244 : vector<1x128xi1>
    %cst_95 = arith.constant 1.000000e+00 : f32
    %246 = vector.broadcast %cst_95 : f32 to vector<1x128xf32>
    %247 = arith.select %245, %240, %246 : vector<1x128xi1>, vector<1x128xf32>
    %cst_96 = arith.constant 1.000000e+00 : f32
    %248 = vector.broadcast %cst_96 : f32 to vector<1x128xf32>
    %249 = arith.divf %248, %247 : vector<1x128xf32>
    %cst_97 = arith.constant 0.000000e+00 : f32
    %250 = vector.broadcast %cst_97 : f32 to vector<1x128xf32>
    %251 = arith.select %245, %249, %250 : vector<1x128xi1>, vector<1x128xf32>
    %c3_98 = arith.constant 3 : index
    %c0_99 = arith.constant 0 : index
    %252 = vector.load %arg7[%c3_98, %c0_99] : memref<8x128xf32, #tpu.memory_space<vmem>>, vector<1x128xf32>
    %253 = arith.addf %252, %251 : vector<1x128xf32>
    %c3_100 = arith.constant 3 : index
    %c0_101 = arith.constant 0 : index
    %254 = vector.load %arg7[%c3_100, %c0_101] : memref<8x128xf32, #tpu.memory_space<vmem>>, vector<1x128xf32>
    tpu.vector_store %arg7[%c3_100, %c0_101], %253 {strides = array<i32>} : memref<8x128xf32, #tpu.memory_space<vmem>>, vector<1x128xf32>,
    %c4 = arith.constant 4 : index
    %c0_102 = arith.constant 0 : index
    %c0_103 = arith.constant 0 : index
    %255 = vector.load %arg2[%c4, %c0_102, %c0_103] : memref<8x3x8xf32, #tpu.memory_space<vmem>>, vector<1x3x8xf32>
    %256 = vector.shape_cast %255 : vector<1x3x8xf32> to vector<3x8xf32>
    %c4_104 = arith.constant 4 : index
    %c0_105 = arith.constant 0 : index
    %c0_106 = arith.constant 0 : index
    %257 = vector.load %arg3[%c4_104, %c0_105, %c0_106] : memref<8x3x3xf32, #tpu.memory_space<vmem>>, vector<1x3x3xf32>
    %258 = vector.shape_cast %257 : vector<1x3x3xf32> to vector<3x3xf32>
    %c4_107 = arith.constant 4 : index
    %c0_108 = arith.constant 0 : index
    %259 = vector.load %arg4[%c4_107, %c0_108] : memref<8x128xi32, #tpu.memory_space<vmem>>, vector<1x128xi32>
    %c4_109 = arith.constant 4 : index
    %c0_110 = arith.constant 0 : index
    %260 = vector.load %arg5[%c4_109, %c0_110] : memref<8x128xi32, #tpu.memory_space<vmem>>, vector<1x128xi32>
    %c24_i32_111 = arith.constant 24 : i32
    %261 = vector.broadcast %c24_i32_111 : i32 to vector<1x128xi32>
    %262 = arith.shli %260, %261 : vector<1x128xi32>
    %c24_i32_112 = arith.constant 24 : i32
    %263 = vector.broadcast %c24_i32_112 : i32 to vector<1x128xi32>
    %264 = arith.shrsi %262, %263 : vector<1x128xi32>
    %265 = arith.sitofp %264 : vector<1x128xi32> to vector<1x128xf32>
    %c16_i32_113 = arith.constant 16 : i32
    %266 = vector.broadcast %c16_i32_113 : i32 to vector<1x128xi32>
    %267 = arith.shli %260, %266 : vector<1x128xi32>
    %c24_i32_114 = arith.constant 24 : i32
    %268 = vector.broadcast %c24_i32_114 : i32 to vector<1x128xi32>
    %269 = arith.shrsi %267, %268 : vector<1x128xi32>
    %270 = arith.sitofp %269 : vector<1x128xi32> to vector<1x128xf32>
    %c8_i32_115 = arith.constant 8 : i32
    %271 = vector.broadcast %c8_i32_115 : i32 to vector<1x128xi32>
    %272 = arith.shli %260, %271 : vector<1x128xi32>
    %c24_i32_116 = arith.constant 24 : i32
    %273 = vector.broadcast %c24_i32_116 : i32 to vector<1x128xi32>
    %274 = arith.shrsi %272, %273 : vector<1x128xi32>
    %275 = arith.sitofp %274 : vector<1x128xi32> to vector<1x128xf32>
    %276 = vector.broadcast %259 : vector<1x128xi32> to vector<8x128xi32>
    %277 = arith.cmpi eq, %7, %276 : vector<8x128xi32>
    %278 = arith.extui %277 : vector<8x128xi1> to vector<8x128xi32>
    %279 = arith.sitofp %278 : vector<8x128xi32> to vector<8x128xf32>
    %280 = arith.subf %279, %18 : vector<8x128xf32>
    %cst_117 = arith.constant dense<0.000000e+00> : vector<3x128xf32>
    %281 = tpu.matmul %256, %280, %cst_117 {dimension_numbers = #tpu.dot_dimension_numbers<[1], [0], [0], [1], [0, 0, 1, 1], [], []>} : vector<3x8xf32>, vector<8x128xf32>, vector<3x128xf32> -> vector<3x128xf32>
    %282 = vector.extract_strided_slice %258 {offsets = [0, 0], sizes = [3, 1], strides = [1, 1]} : vector<3x3xf32> to vector<3x1xf32>
    %283 = vector.broadcast %282 : vector<3x1xf32> to vector<3x128xf32>
    %284 = vector.broadcast %265 : vector<1x128xf32> to vector<3x128xf32>
    %285 = arith.mulf %283, %284 : vector<3x128xf32>
    %286 = arith.addf %281, %285 : vector<3x128xf32>
    %287 = vector.extract_strided_slice %258 {offsets = [0, 1], sizes = [3, 1], strides = [1, 1]} : vector<3x3xf32> to vector<3x1xf32>
    %288 = vector.broadcast %287 : vector<3x1xf32> to vector<3x128xf32>
    %289 = vector.broadcast %270 : vector<1x128xf32> to vector<3x128xf32>
    %290 = arith.mulf %288, %289 : vector<3x128xf32>
    %291 = arith.addf %286, %290 : vector<3x128xf32>
    %292 = vector.extract_strided_slice %258 {offsets = [0, 2], sizes = [3, 1], strides = [1, 1]} : vector<3x3xf32> to vector<3x1xf32>
    %293 = vector.broadcast %292 : vector<3x1xf32> to vector<3x128xf32>
    %294 = vector.broadcast %275 : vector<1x128xf32> to vector<3x128xf32>
    %295 = arith.mulf %293, %294 : vector<3x128xf32>
    %296 = arith.addf %291, %295 : vector<3x128xf32>
    %297 = arith.mulf %296, %296 : vector<3x128xf32>
    %cst_118 = arith.constant dense<0.000000e+00> : vector<128xf32>
    %298 = vector.multi_reduction <add>, %297, %cst_118 [0] : vector<3x128xf32> to vector<128xf32>
    %299 = vector.shape_cast %298 : vector<128xf32> to vector<1x128xf32>
    %cst_119 = arith.constant 0.00999999977 : f32
    %300 = vector.broadcast %cst_119 : f32 to vector<1x128xf32>
    %301 = arith.cmpf oge, %299, %300 : vector<1x128xf32>
    %cst_120 = arith.constant 4.000000e+00 : f32
    %302 = vector.broadcast %cst_120 : f32 to vector<1x128xf32>
    %303 = arith.cmpf ole, %299, %302 : vector<1x128xf32>
    %304 = arith.andi %301, %303 : vector<1x128xi1>
    %cst_121 = arith.constant 1.000000e+00 : f32
    %305 = vector.broadcast %cst_121 : f32 to vector<1x128xf32>
    %306 = arith.select %304, %299, %305 : vector<1x128xi1>, vector<1x128xf32>
    %cst_122 = arith.constant 1.000000e+00 : f32
    %307 = vector.broadcast %cst_122 : f32 to vector<1x128xf32>
    %308 = arith.divf %307, %306 : vector<1x128xf32>
    %cst_123 = arith.constant 0.000000e+00 : f32
    %309 = vector.broadcast %cst_123 : f32 to vector<1x128xf32>
    %310 = arith.select %304, %308, %309 : vector<1x128xi1>, vector<1x128xf32>
    %c4_124 = arith.constant 4 : index
    %c0_125 = arith.constant 0 : index
    %311 = vector.load %arg7[%c4_124, %c0_125] : memref<8x128xf32, #tpu.memory_space<vmem>>, vector<1x128xf32>
    %312 = arith.addf %311, %310 : vector<1x128xf32>
    %c4_126 = arith.constant 4 : index
    %c0_127 = arith.constant 0 : index
    %313 = vector.load %arg7[%c4_126, %c0_127] : memref<8x128xf32, #tpu.memory_space<vmem>>, vector<1x128xf32>
    tpu.vector_store %arg7[%c4_126, %c0_127], %312 {strides = array<i32>} : memref<8x128xf32, #tpu.memory_space<vmem>>, vector<1x128xf32>,
    %c5 = arith.constant 5 : index
    %c0_128 = arith.constant 0 : index
    %c0_129 = arith.constant 0 : index
    %314 = vector.load %arg2[%c5, %c0_128, %c0_129] : memref<8x3x8xf32, #tpu.memory_space<vmem>>, vector<1x3x8xf32>
    %315 = vector.shape_cast %314 : vector<1x3x8xf32> to vector<3x8xf32>
    %c5_130 = arith.constant 5 : index
    %c0_131 = arith.constant 0 : index
    %c0_132 = arith.constant 0 : index
    %316 = vector.load %arg3[%c5_130, %c0_131, %c0_132] : memref<8x3x3xf32, #tpu.memory_space<vmem>>, vector<1x3x3xf32>
    %317 = vector.shape_cast %316 : vector<1x3x3xf32> to vector<3x3xf32>
    %c5_133 = arith.constant 5 : index
    %c0_134 = arith.constant 0 : index
    %318 = vector.load %arg4[%c5_133, %c0_134] : memref<8x128xi32, #tpu.memory_space<vmem>>, vector<1x128xi32>
    %c5_135 = arith.constant 5 : index
    %c0_136 = arith.constant 0 : index
    %319 = vector.load %arg5[%c5_135, %c0_136] : memref<8x128xi32, #tpu.memory_space<vmem>>, vector<1x128xi32>
    %c24_i32_137 = arith.constant 24 : i32
    %320 = vector.broadcast %c24_i32_137 : i32 to vector<1x128xi32>
    %321 = arith.shli %319, %320 : vector<1x128xi32>
    %c24_i32_138 = arith.constant 24 : i32
    %322 = vector.broadcast %c24_i32_138 : i32 to vector<1x128xi32>
    %323 = arith.shrsi %321, %322 : vector<1x128xi32>
    %324 = arith.sitofp %323 : vector<1x128xi32> to vector<1x128xf32>
    %c16_i32_139 = arith.constant 16 : i32
    %325 = vector.broadcast %c16_i32_139 : i32 to vector<1x128xi32>
    %326 = arith.shli %319, %325 : vector<1x128xi32>
    %c24_i32_140 = arith.constant 24 : i32
    %327 = vector.broadcast %c24_i32_140 : i32 to vector<1x128xi32>
    %328 = arith.shrsi %326, %327 : vector<1x128xi32>
    %329 = arith.sitofp %328 : vector<1x128xi32> to vector<1x128xf32>
    %c8_i32_141 = arith.constant 8 : i32
    %330 = vector.broadcast %c8_i32_141 : i32 to vector<1x128xi32>
    %331 = arith.shli %319, %330 : vector<1x128xi32>
    %c24_i32_142 = arith.constant 24 : i32
    %332 = vector.broadcast %c24_i32_142 : i32 to vector<1x128xi32>
    %333 = arith.shrsi %331, %332 : vector<1x128xi32>
    %334 = arith.sitofp %333 : vector<1x128xi32> to vector<1x128xf32>
    %335 = vector.broadcast %318 : vector<1x128xi32> to vector<8x128xi32>
    %336 = arith.cmpi eq, %7, %335 : vector<8x128xi32>
    %337 = arith.extui %336 : vector<8x128xi1> to vector<8x128xi32>
    %338 = arith.sitofp %337 : vector<8x128xi32> to vector<8x128xf32>
    %339 = arith.subf %338, %18 : vector<8x128xf32>
    %cst_143 = arith.constant dense<0.000000e+00> : vector<3x128xf32>
    %340 = tpu.matmul %315, %339, %cst_143 {dimension_numbers = #tpu.dot_dimension_numbers<[1], [0], [0], [1], [0, 0, 1, 1], [], []>} : vector<3x8xf32>, vector<8x128xf32>, vector<3x128xf32> -> vector<3x128xf32>
    %341 = vector.extract_strided_slice %317 {offsets = [0, 0], sizes = [3, 1], strides = [1, 1]} : vector<3x3xf32> to vector<3x1xf32>
    %342 = vector.broadcast %341 : vector<3x1xf32> to vector<3x128xf32>
    %343 = vector.broadcast %324 : vector<1x128xf32> to vector<3x128xf32>
    %344 = arith.mulf %342, %343 : vector<3x128xf32>
    %345 = arith.addf %340, %344 : vector<3x128xf32>
    %346 = vector.extract_strided_slice %317 {offsets = [0, 1], sizes = [3, 1], strides = [1, 1]} : vector<3x3xf32> to vector<3x1xf32>
    %347 = vector.broadcast %346 : vector<3x1xf32> to vector<3x128xf32>
    %348 = vector.broadcast %329 : vector<1x128xf32> to vector<3x128xf32>
    %349 = arith.mulf %347, %348 : vector<3x128xf32>
    %350 = arith.addf %345, %349 : vector<3x128xf32>
    %351 = vector.extract_strided_slice %317 {offsets = [0, 2], sizes = [3, 1], strides = [1, 1]} : vector<3x3xf32> to vector<3x1xf32>
    %352 = vector.broadcast %351 : vector<3x1xf32> to vector<3x128xf32>
    %353 = vector.broadcast %334 : vector<1x128xf32> to vector<3x128xf32>
    %354 = arith.mulf %352, %353 : vector<3x128xf32>
    %355 = arith.addf %350, %354 : vector<3x128xf32>
    %356 = arith.mulf %355, %355 : vector<3x128xf32>
    %cst_144 = arith.constant dense<0.000000e+00> : vector<128xf32>
    %357 = vector.multi_reduction <add>, %356, %cst_144 [0] : vector<3x128xf32> to vector<128xf32>
    %358 = vector.shape_cast %357 : vector<128xf32> to vector<1x128xf32>
    %cst_145 = arith.constant 0.00999999977 : f32
    %359 = vector.broadcast %cst_145 : f32 to vector<1x128xf32>
    %360 = arith.cmpf oge, %358, %359 : vector<1x128xf32>
    %cst_146 = arith.constant 4.000000e+00 : f32
    %361 = vector.broadcast %cst_146 : f32 to vector<1x128xf32>
    %362 = arith.cmpf ole, %358, %361 : vector<1x128xf32>
    %363 = arith.andi %360, %362 : vector<1x128xi1>
    %cst_147 = arith.constant 1.000000e+00 : f32
    %364 = vector.broadcast %cst_147 : f32 to vector<1x128xf32>
    %365 = arith.select %363, %358, %364 : vector<1x128xi1>, vector<1x128xf32>
    %cst_148 = arith.constant 1.000000e+00 : f32
    %366 = vector.broadcast %cst_148 : f32 to vector<1x128xf32>
    %367 = arith.divf %366, %365 : vector<1x128xf32>
    %cst_149 = arith.constant 0.000000e+00 : f32
    %368 = vector.broadcast %cst_149 : f32 to vector<1x128xf32>
    %369 = arith.select %363, %367, %368 : vector<1x128xi1>, vector<1x128xf32>
    %c5_150 = arith.constant 5 : index
    %c0_151 = arith.constant 0 : index
    %370 = vector.load %arg7[%c5_150, %c0_151] : memref<8x128xf32, #tpu.memory_space<vmem>>, vector<1x128xf32>
    %371 = arith.addf %370, %369 : vector<1x128xf32>
    %c5_152 = arith.constant 5 : index
    %c0_153 = arith.constant 0 : index
    %372 = vector.load %arg7[%c5_152, %c0_153] : memref<8x128xf32, #tpu.memory_space<vmem>>, vector<1x128xf32>
    tpu.vector_store %arg7[%c5_152, %c0_153], %371 {strides = array<i32>} : memref<8x128xf32, #tpu.memory_space<vmem>>, vector<1x128xf32>,
    %c6 = arith.constant 6 : index
    %c0_154 = arith.constant 0 : index
    %c0_155 = arith.constant 0 : index
    %373 = vector.load %arg2[%c6, %c0_154, %c0_155] : memref<8x3x8xf32, #tpu.memory_space<vmem>>, vector<1x3x8xf32>
    %374 = vector.shape_cast %373 : vector<1x3x8xf32> to vector<3x8xf32>
    %c6_156 = arith.constant 6 : index
    %c0_157 = arith.constant 0 : index
    %c0_158 = arith.constant 0 : index
    %375 = vector.load %arg3[%c6_156, %c0_157, %c0_158] : memref<8x3x3xf32, #tpu.memory_space<vmem>>, vector<1x3x3xf32>
    %376 = vector.shape_cast %375 : vector<1x3x3xf32> to vector<3x3xf32>
    %c6_159 = arith.constant 6 : index
    %c0_160 = arith.constant 0 : index
    %377 = vector.load %arg4[%c6_159, %c0_160] : memref<8x128xi32, #tpu.memory_space<vmem>>, vector<1x128xi32>
    %c6_161 = arith.constant 6 : index
    %c0_162 = arith.constant 0 : index
    %378 = vector.load %arg5[%c6_161, %c0_162] : memref<8x128xi32, #tpu.memory_space<vmem>>, vector<1x128xi32>
    %c24_i32_163 = arith.constant 24 : i32
    %379 = vector.broadcast %c24_i32_163 : i32 to vector<1x128xi32>
    %380 = arith.shli %378, %379 : vector<1x128xi32>
    %c24_i32_164 = arith.constant 24 : i32
    %381 = vector.broadcast %c24_i32_164 : i32 to vector<1x128xi32>
    %382 = arith.shrsi %380, %381 : vector<1x128xi32>
    %383 = arith.sitofp %382 : vector<1x128xi32> to vector<1x128xf32>
    %c16_i32_165 = arith.constant 16 : i32
    %384 = vector.broadcast %c16_i32_165 : i32 to vector<1x128xi32>
    %385 = arith.shli %378, %384 : vector<1x128xi32>
    %c24_i32_166 = arith.constant 24 : i32
    %386 = vector.broadcast %c24_i32_166 : i32 to vector<1x128xi32>
    %387 = arith.shrsi %385, %386 : vector<1x128xi32>
    %388 = arith.sitofp %387 : vector<1x128xi32> to vector<1x128xf32>
    %c8_i32_167 = arith.constant 8 : i32
    %389 = vector.broadcast %c8_i32_167 : i32 to vector<1x128xi32>
    %390 = arith.shli %378, %389 : vector<1x128xi32>
    %c24_i32_168 = arith.constant 24 : i32
    %391 = vector.broadcast %c24_i32_168 : i32 to vector<1x128xi32>
    %392 = arith.shrsi %390, %391 : vector<1x128xi32>
    %393 = arith.sitofp %392 : vector<1x128xi32> to vector<1x128xf32>
    %394 = vector.broadcast %377 : vector<1x128xi32> to vector<8x128xi32>
    %395 = arith.cmpi eq, %7, %394 : vector<8x128xi32>
    %396 = arith.extui %395 : vector<8x128xi1> to vector<8x128xi32>
    %397 = arith.sitofp %396 : vector<8x128xi32> to vector<8x128xf32>
    %398 = arith.subf %397, %18 : vector<8x128xf32>
    %cst_169 = arith.constant dense<0.000000e+00> : vector<3x128xf32>
    %399 = tpu.matmul %374, %398, %cst_169 {dimension_numbers = #tpu.dot_dimension_numbers<[1], [0], [0], [1], [0, 0, 1, 1], [], []>} : vector<3x8xf32>, vector<8x128xf32>, vector<3x128xf32> -> vector<3x128xf32>
    %400 = vector.extract_strided_slice %376 {offsets = [0, 0], sizes = [3, 1], strides = [1, 1]} : vector<3x3xf32> to vector<3x1xf32>
    %401 = vector.broadcast %400 : vector<3x1xf32> to vector<3x128xf32>
    %402 = vector.broadcast %383 : vector<1x128xf32> to vector<3x128xf32>
    %403 = arith.mulf %401, %402 : vector<3x128xf32>
    %404 = arith.addf %399, %403 : vector<3x128xf32>
    %405 = vector.extract_strided_slice %376 {offsets = [0, 1], sizes = [3, 1], strides = [1, 1]} : vector<3x3xf32> to vector<3x1xf32>
    %406 = vector.broadcast %405 : vector<3x1xf32> to vector<3x128xf32>
    %407 = vector.broadcast %388 : vector<1x128xf32> to vector<3x128xf32>
    %408 = arith.mulf %406, %407 : vector<3x128xf32>
    %409 = arith.addf %404, %408 : vector<3x128xf32>
    %410 = vector.extract_strided_slice %376 {offsets = [0, 2], sizes = [3, 1], strides = [1, 1]} : vector<3x3xf32> to vector<3x1xf32>
    %411 = vector.broadcast %410 : vector<3x1xf32> to vector<3x128xf32>
    %412 = vector.broadcast %393 : vector<1x128xf32> to vector<3x128xf32>
    %413 = arith.mulf %411, %412 : vector<3x128xf32>
    %414 = arith.addf %409, %413 : vector<3x128xf32>
    %415 = arith.mulf %414, %414 : vector<3x128xf32>
    %cst_170 = arith.constant dense<0.000000e+00> : vector<128xf32>
    %416 = vector.multi_reduction <add>, %415, %cst_170 [0] : vector<3x128xf32> to vector<128xf32>
    %417 = vector.shape_cast %416 : vector<128xf32> to vector<1x128xf32>
    %cst_171 = arith.constant 0.00999999977 : f32
    %418 = vector.broadcast %cst_171 : f32 to vector<1x128xf32>
    %419 = arith.cmpf oge, %417, %418 : vector<1x128xf32>
    %cst_172 = arith.constant 4.000000e+00 : f32
    %420 = vector.broadcast %cst_172 : f32 to vector<1x128xf32>
    %421 = arith.cmpf ole, %417, %420 : vector<1x128xf32>
    %422 = arith.andi %419, %421 : vector<1x128xi1>
    %cst_173 = arith.constant 1.000000e+00 : f32
    %423 = vector.broadcast %cst_173 : f32 to vector<1x128xf32>
    %424 = arith.select %422, %417, %423 : vector<1x128xi1>, vector<1x128xf32>
    %cst_174 = arith.constant 1.000000e+00 : f32
    %425 = vector.broadcast %cst_174 : f32 to vector<1x128xf32>
    %426 = arith.divf %425, %424 : vector<1x128xf32>
    %cst_175 = arith.constant 0.000000e+00 : f32
    %427 = vector.broadcast %cst_175 : f32 to vector<1x128xf32>
    %428 = arith.select %422, %426, %427 : vector<1x128xi1>, vector<1x128xf32>
    %c6_176 = arith.constant 6 : index
    %c0_177 = arith.constant 0 : index
    %429 = vector.load %arg7[%c6_176, %c0_177] : memref<8x128xf32, #tpu.memory_space<vmem>>, vector<1x128xf32>
    %430 = arith.addf %429, %428 : vector<1x128xf32>
    %c6_178 = arith.constant 6 : index
    %c0_179 = arith.constant 0 : index
    %431 = vector.load %arg7[%c6_178, %c0_179] : memref<8x128xf32, #tpu.memory_space<vmem>>, vector<1x128xf32>
    tpu.vector_store %arg7[%c6_178, %c0_179], %430 {strides = array<i32>} : memref<8x128xf32, #tpu.memory_space<vmem>>, vector<1x128xf32>,
    %c7 = arith.constant 7 : index
    %c0_180 = arith.constant 0 : index
    %c0_181 = arith.constant 0 : index
    %432 = vector.load %arg2[%c7, %c0_180, %c0_181] : memref<8x3x8xf32, #tpu.memory_space<vmem>>, vector<1x3x8xf32>
    %433 = vector.shape_cast %432 : vector<1x3x8xf32> to vector<3x8xf32>
    %c7_182 = arith.constant 7 : index
    %c0_183 = arith.constant 0 : index
    %c0_184 = arith.constant 0 : index
    %434 = vector.load %arg3[%c7_182, %c0_183, %c0_184] : memref<8x3x3xf32, #tpu.memory_space<vmem>>, vector<1x3x3xf32>
    %435 = vector.shape_cast %434 : vector<1x3x3xf32> to vector<3x3xf32>
    %c7_185 = arith.constant 7 : index
    %c0_186 = arith.constant 0 : index
    %436 = vector.load %arg4[%c7_185, %c0_186] : memref<8x128xi32, #tpu.memory_space<vmem>>, vector<1x128xi32>
    %c7_187 = arith.constant 7 : index
    %c0_188 = arith.constant 0 : index
    %437 = vector.load %arg5[%c7_187, %c0_188] : memref<8x128xi32, #tpu.memory_space<vmem>>, vector<1x128xi32>
    %c24_i32_189 = arith.constant 24 : i32
    %438 = vector.broadcast %c24_i32_189 : i32 to vector<1x128xi32>
    %439 = arith.shli %437, %438 : vector<1x128xi32>
    %c24_i32_190 = arith.constant 24 : i32
    %440 = vector.broadcast %c24_i32_190 : i32 to vector<1x128xi32>
    %441 = arith.shrsi %439, %440 : vector<1x128xi32>
    %442 = arith.sitofp %441 : vector<1x128xi32> to vector<1x128xf32>
    %c16_i32_191 = arith.constant 16 : i32
    %443 = vector.broadcast %c16_i32_191 : i32 to vector<1x128xi32>
    %444 = arith.shli %437, %443 : vector<1x128xi32>
    %c24_i32_192 = arith.constant 24 : i32
    %445 = vector.broadcast %c24_i32_192 : i32 to vector<1x128xi32>
    %446 = arith.shrsi %444, %445 : vector<1x128xi32>
    %447 = arith.sitofp %446 : vector<1x128xi32> to vector<1x128xf32>
    %c8_i32_193 = arith.constant 8 : i32
    %448 = vector.broadcast %c8_i32_193 : i32 to vector<1x128xi32>
    %449 = arith.shli %437, %448 : vector<1x128xi32>
    %c24_i32_194 = arith.constant 24 : i32
    %450 = vector.broadcast %c24_i32_194 : i32 to vector<1x128xi32>
    %451 = arith.shrsi %449, %450 : vector<1x128xi32>
    %452 = arith.sitofp %451 : vector<1x128xi32> to vector<1x128xf32>
    %453 = vector.broadcast %436 : vector<1x128xi32> to vector<8x128xi32>
    %454 = arith.cmpi eq, %7, %453 : vector<8x128xi32>
    %455 = arith.extui %454 : vector<8x128xi1> to vector<8x128xi32>
    %456 = arith.sitofp %455 : vector<8x128xi32> to vector<8x128xf32>
    %457 = arith.subf %456, %18 : vector<8x128xf32>
    %cst_195 = arith.constant dense<0.000000e+00> : vector<3x128xf32>
    %458 = tpu.matmul %433, %457, %cst_195 {dimension_numbers = #tpu.dot_dimension_numbers<[1], [0], [0], [1], [0, 0, 1, 1], [], []>} : vector<3x8xf32>, vector<8x128xf32>, vector<3x128xf32> -> vector<3x128xf32>
    %459 = vector.extract_strided_slice %435 {offsets = [0, 0], sizes = [3, 1], strides = [1, 1]} : vector<3x3xf32> to vector<3x1xf32>
    %460 = vector.broadcast %459 : vector<3x1xf32> to vector<3x128xf32>
    %461 = vector.broadcast %442 : vector<1x128xf32> to vector<3x128xf32>
    %462 = arith.mulf %460, %461 : vector<3x128xf32>
    %463 = arith.addf %458, %462 : vector<3x128xf32>
    %464 = vector.extract_strided_slice %435 {offsets = [0, 1], sizes = [3, 1], strides = [1, 1]} : vector<3x3xf32> to vector<3x1xf32>
    %465 = vector.broadcast %464 : vector<3x1xf32> to vector<3x128xf32>
    %466 = vector.broadcast %447 : vector<1x128xf32> to vector<3x128xf32>
    %467 = arith.mulf %465, %466 : vector<3x128xf32>
    %468 = arith.addf %463, %467 : vector<3x128xf32>
    %469 = vector.extract_strided_slice %435 {offsets = [0, 2], sizes = [3, 1], strides = [1, 1]} : vector<3x3xf32> to vector<3x1xf32>
    %470 = vector.broadcast %469 : vector<3x1xf32> to vector<3x128xf32>
    %471 = vector.broadcast %452 : vector<1x128xf32> to vector<3x128xf32>
    %472 = arith.mulf %470, %471 : vector<3x128xf32>
    %473 = arith.addf %468, %472 : vector<3x128xf32>
    %474 = arith.mulf %473, %473 : vector<3x128xf32>
    %cst_196 = arith.constant dense<0.000000e+00> : vector<128xf32>
    %475 = vector.multi_reduction <add>, %474, %cst_196 [0] : vector<3x128xf32> to vector<128xf32>
    %476 = vector.shape_cast %475 : vector<128xf32> to vector<1x128xf32>
    %cst_197 = arith.constant 0.00999999977 : f32
    %477 = vector.broadcast %cst_197 : f32 to vector<1x128xf32>
    %478 = arith.cmpf oge, %476, %477 : vector<1x128xf32>
    %cst_198 = arith.constant 4.000000e+00 : f32
    %479 = vector.broadcast %cst_198 : f32 to vector<1x128xf32>
    %480 = arith.cmpf ole, %476, %479 : vector<1x128xf32>
    %481 = arith.andi %478, %480 : vector<1x128xi1>
    %cst_199 = arith.constant 1.000000e+00 : f32
    %482 = vector.broadcast %cst_199 : f32 to vector<1x128xf32>
    %483 = arith.select %481, %476, %482 : vector<1x128xi1>, vector<1x128xf32>
    %cst_200 = arith.constant 1.000000e+00 : f32
    %484 = vector.broadcast %cst_200 : f32 to vector<1x128xf32>
    %485 = arith.divf %484, %483 : vector<1x128xf32>
    %cst_201 = arith.constant 0.000000e+00 : f32
    %486 = vector.broadcast %cst_201 : f32 to vector<1x128xf32>
    %487 = arith.select %481, %485, %486 : vector<1x128xi1>, vector<1x128xf32>
    %c7_202 = arith.constant 7 : index
    %c0_203 = arith.constant 0 : index
    %488 = vector.load %arg7[%c7_202, %c0_203] : memref<8x128xf32, #tpu.memory_space<vmem>>, vector<1x128xf32>
    %489 = arith.addf %488, %487 : vector<1x128xf32>
    %c7_204 = arith.constant 7 : index
    %c0_205 = arith.constant 0 : index
    %490 = vector.load %arg7[%c7_204, %c0_205] : memref<8x128xf32, #tpu.memory_space<vmem>>, vector<1x128xf32>
    tpu.vector_store %arg7[%c7_204, %c0_205], %489 {strides = array<i32>} : memref<8x128xf32, #tpu.memory_space<vmem>>, vector<1x128xf32>,
    %c0_i32_206 = arith.constant 0 : i32
    %491 = arith.cmpi eq, %arg1, %c0_i32_206 : i32
    %492 = arith.extui %491 : i1 to i32
    %c0_i32_207 = arith.constant 0 : i32
    %493 = arith.cmpi ne, %492, %c0_i32_207 : i32
    scf.if %493 {
      %c0_208 = arith.constant 0 : index
      %c0_209 = arith.constant 0 : index
      %494 = vector.load %arg7[%c0_208, %c0_209] : memref<8x128xf32, #tpu.memory_space<vmem>>, vector<8x128xf32>
      %cst_210 = arith.constant dense<0.000000e+00> : vector<8xf32>
      %495 = vector.multi_reduction <add>, %494, %cst_210 [1] : vector<8x128xf32> to vector<8xf32>
      %496 = vector.shape_cast %495 : vector<8xf32> to vector<8x1xf32>
      %cst_211 = arith.constant 5.000000e-01 : f32
      %497 = vector.broadcast %cst_211 : f32 to vector<8x1xf32>
      %498 = arith.mulf %497, %496 : vector<8x1xf32>
      %499 = vector.shape_cast %498 : vector<8x1xf32> to vector<1x8x1xf32>
      %500 = vector.broadcast %499 : vector<1x8x1xf32> to vector<1x8x128xf32>
      %c0_212 = arith.constant 0 : index
      %c0_213 = arith.constant 0 : index
      %c0_214 = arith.constant 0 : index
      %501 = vector.load %arg6[%c0_212, %c0_213, %c0_214] : memref<1x8x128xf32, #tpu.memory_space<vmem>>, vector<1x8x128xf32>
      tpu.vector_store %arg6[%c0_212, %c0_213, %c0_214], %500 {strides = array<i32>} : memref<1x8x128xf32, #tpu.memory_space<vmem>>, vector<1x8x128xf32>,
    } else {
    }
    return
  }
  func.func @transform_0(%arg0: i32, %arg1: i32) -> (i32, i32, i32) {
    %c0_i32 = arith.constant 0 : i32
    %c0_i32_0 = arith.constant 0 : i32
    %c0_i32_1 = arith.constant 0 : i32
    return %arg0, %c0_i32, %c0_i32_0 : i32, i32, i32
  }
  func.func @transform_1(%arg0: i32, %arg1: i32) -> (i32, i32, i32) {
    %c0_i32 = arith.constant 0 : i32
    %c0_i32_0 = arith.constant 0 : i32
    %c0_i32_1 = arith.constant 0 : i32
    return %arg0, %c0_i32, %c0_i32_0 : i32, i32, i32
  }
  func.func @transform_2(%arg0: i32, %arg1: i32) -> (i32, i32) {
    %c0_i32 = arith.constant 0 : i32
    return %arg0, %arg1 : i32, i32
  }
  func.func @transform_3(%arg0: i32, %arg1: i32) -> (i32, i32) {
    %c0_i32 = arith.constant 0 : i32
    return %arg0, %arg1 : i32, i32
  }
  func.func @transform_4(%arg0: i32, %arg1: i32) -> (i32, i32, i32) {
    %c0_i32 = arith.constant 0 : i32
    %c0_i32_0 = arith.constant 0 : i32
    %c0_i32_1 = arith.constant 0 : i32
    return %arg0, %c0_i32, %c0_i32_0 : i32, i32, i32
  }
}

</mosaic_0001>

<bundles_post_ra>
// kernel: tpu_custom_call.1
= control target key start
LH: loop header
LB: loop body
LE: loop exit
PB: predicated region body
PF: predicated region fallthrough
CT: control target
= control target key end

     0   :  { %v24_v2 = vlaneseq  ;;  %v917_v3 = vmov 2   ;;  %v918_v4 = vmov 0   ;;  %v919_v7 = vmov 0.0   ;;  %s1259_s0 = inlined_call_operand.vmem [shape: f32[8,3,8], index: 0, kind: input, shape index: {}]   ;;  %s1260_s1 = inlined_call_operand.vmem [shape: f32[8,3,3], index: 1, kind: input, shape index: {}]   ;;  %s1261_s2 = inlined_call_operand.vmem [shape: s32[8,128], index: 2, kind: input, shape index: {}]   ;;  %s1262_s3 = inlined_call_operand.vmem [shape: s32[8,128], index: 3, kind: input, shape index: {}]   ;;  %s1263_s4 = inlined_call_operand.hbm [shape: f32[1,8,128], index: 4, kind: output, shape index: {}]  }
   0x1   :  { %v950_v0 = vld [vmem:[%s1260_s1 + $0x8] sm:$0x7]  ;;  %v955_v1 = vld [vmem:[%s1260_s1] sm:$0x7]  ;;  %858 = vset.pattern.permute.xlu1 %v917_v3  ;;  %860 = vset.pattern.permute.xlu2 %v918_v4  ;;  %22 = vst [vmem:[#allocation2] sm:$0xff] %v919_v7  ;;  %vm62_vm7 = vcmask 64512  }
   0x2   :  { %249 = vperm.xlu2 %860, %v950_v0   ;;  %94 = vperm.xlu1 %858, %v955_v1   ;;  %v25_v5 = vand.u32 127, %v24_v2  ;;  %v29_v6 = vshrl.u32 %v24_v2, 7  ;;  %v867_v8 = vld [vmem:[%s1261_s2] ss:$0 sm:$0xff]  ;;  %v868_v10 = vld [vmem:[%s1261_s2 + $0x1] ss:$0 sm:$0xff] }
   0x3   :  { %857 = vset.pattern.permute.xlu0 %v918_v4  ;;  %v869_v11 = vld [vmem:[%s1261_s2 + $0x2] ss:$0 sm:$0xff]  ;;  %v870_v12 = vld [vmem:[%s1261_s2 + $0x3] ss:$0 sm:$0xff]  ;;  %v976_v14 = vld [vmem:[%s1260_s1 + $0xc] sm:$0x7] }
   0x4   :  { %57 = vperm.xlu0 %857, %v955_v1   ;;  %v30_v9 = vmul.u32 6, %v29_v6  ;;  %vm51_vm0 = vcmp.eq.s32.totalorder %v29_v6, %v867_v8  ;;  %vm148_vm2 = vcmp.eq.s32.totalorder %v29_v6, %v868_v10  ;;  %v981_v15 = vld [vmem:[%s1260_s1 + $0x4] sm:$0x7]  ;;  %vm243_vm3 = vcmp.eq.s32.totalorder %v29_v6, %v869_v11  ;;  %v986_v17 = vld [vmem:[%s1260_s1 + $0x18] sm:$0x7] }
   0x5   :  { %v822_v16 = vsel %vm51_vm0, 1.0, %v919_v7  ;;  %vm338_vm4 = vcmp.eq.s32.totalorder %v29_v6, %v870_v12  ;;  %v826_v18 = vsel %vm148_vm2, 1.0, %v919_v7  ;;  %v830_v19 = vsel %vm243_vm3, 1.0, %v919_v7  ;;  %v871_v21 = vld [vmem:[%s1261_s2 + $0x4] ss:$0 sm:$0xff] }
   0x6   :  { %vm31_vm1 = vcmp.ge.s32.totalorder %v25_v5, %v30_v9  ;;  %v32_v13 = vadd.s32 6, %v30_v9  ;;  %v834_v20 = vsel %vm338_vm4, 1.0, %v919_v7  ;;  %v872_v23 = vld [vmem:[%s1261_s2 + $0x5] ss:$0 sm:$0xff]  ;;  %v873_v28 = vld [vmem:[%s1261_s2 + $0x6] ss:$0 sm:$0xff]  ;;  %vm433_vm8 = vcmp.eq.s32.totalorder %v29_v6, %v871_v21 }
   0x7   :  { %v37_v29 = vld [vmem:[%s1259_s0] sm:$0x7]  ;;  %v824_v30 = vld [vmem:[%s1259_s0 + $0x4] sm:$0x7]  ;;  %vm528_vm9 = vcmp.eq.s32.totalorder %v29_v6, %v872_v23  ;;  %v874_v31 = vld [vmem:[%s1261_s2 + $0x7] ss:$0 sm:$0xff]  ;;  %vm623_vm10 = vcmp.eq.s32.totalorder %v29_v6, %v873_v28 }
   0x8   :  { %vm33_vm5 = vcmp.lt.s32.totalorder %v25_v5, %v32_v13  ;;  %v828_v32 = vld [vmem:[%s1259_s0 + $0x8] sm:$0x7]  ;;  %v832_v33 = vld [vmem:[%s1259_s0 + $0xc] sm:$0x7]  ;;  %v838_v34 = vsel %vm433_vm8, 1.0, %v919_v7  ;;  %v842_v35 = vsel %vm528_vm9, 1.0, %v919_v7  ;;  %vm718_vm11 = vcmp.eq.s32.totalorder %v29_v6, %v874_v31 }
   0x9   :  { %vm34_vm6 = vmand %vm31_vm1, %vm33_vm5  ;;  %v846_v38 = vsel %vm623_vm10, 1.0, %v919_v7 }
   0xa   :  { %344 = vperm.xlu2 %860, %v976_v14   ;;  %859 = vset.pattern.permute.xlu1 %v918_v4  ;;  %v821_v22 = vsel %vm34_vm6, 1.0, %v919_v7 }
   0xb   :  { %154 = vperm.xlu1 %859, %v981_v15   ;;  %v54_v24 = vsub.f32 %v822_v16, %v821_v22  ;;  %v151_v25 = vsub.f32 %v826_v18, %v821_v22  ;;  %v246_v26 = vsub.f32 %v830_v19, %v821_v22  ;;  %v341_v27 = vsub.f32 %v834_v20, %v821_v22 }
   0xc   :  { %629 = vperm.xlu0 %857, %v986_v17   ;;  %v436_v36 = vsub.f32 %v838_v34, %v821_v22  ;;  %v531_v37 = vsub.f32 %v842_v35, %v821_v22 }
   0xd   :  { %81 = vmatpush.msra.mxu0 %v54_v24  ;;  %177 = vmatpush.msra.mxu1 %v151_v25 }
   0xe   :  { %272 = vmatpush.msra.mxu2 %v246_v26  ;;  %367 = vmatpush.msra.mxu3 %v341_v27 }
   0xf   :  { %9 = vsyncpa [#allocation4], 0  ;;  %823 = vmatmul.msk.f32.vlgmr.msra.gmra.mxu0 %vm62_vm7, %v37_v29  ;;  %827 = vmatmul.msk.f32.vlgmr.msra.gmra.mxu1 %vm62_vm7, %v824_v30  ;;  %v841_v39 = vld [vmem:[%s1260_s1 + $0x14] sm:$0x7]  ;;  %v626_v40 = vsub.f32 %v846_v38, %v821_v22  ;;  %v850_v41 = vsel %vm718_vm11, 1.0, %v919_v7  ;;  %v920_v44 = vmov 1  }
  0x10   :  { %831 = vmatmul.msk.f32.vlgmr.msra.gmra.mxu2 %vm62_vm7, %v828_v32  ;;  %835 = vmatmul.msk.f32.vlgmr.msra.gmra.mxu3 %vm62_vm7, %v832_v33  ;;  %v837_v42 = vld [vmem:[%s1260_s1 + $0x10] sm:$0x7]  ;;  %v721_v43 = vsub.f32 %v850_v41, %v821_v22  ;;  %v840_v46 = vld [vmem:[%s1259_s0 + $0x14] sm:$0x7]  ;;  %v844_v47 = vld [vmem:[%s1259_s0 + $0x18] sm:$0x7] }
  0x11   :  { %462 = vmatpush.msrb.mxu0 %v436_v36  ;;  %557 = vmatpush.msrb.mxu1 %v531_v37  ;;  %v836_v45 = vld [vmem:[%s1259_s0 + $0x10] sm:$0x7]  ;;  %v848_v48 = vld [vmem:[%s1259_s0 + $0x1c] sm:$0x7]  ;;  %v40_v56 = vld [vmem:[%s1262_s3] sm:$0x1] }
  0x12   :  { %534 = vperm.xlu2 %860, %v841_v39   ;;  %652 = vmatpush.msrb.mxu2 %v626_v40  ;;  %v849_v49 = vld [vmem:[%s1260_s1 + $0x1c] sm:$0x7]  ;;  %v137_v57 = vld [vmem:[%s1262_s3 + $0x1] sm:$0x1]  ;;  %v1075_v58 = vld [vmem:[%s1262_s3 + $0x2] sm:$0x1] }
  0x13   :  { %439 = vperm.xlu1 %859, %v837_v42   ;;  %747 = vmatpush.msrb.mxu3 %v721_v43  ;;  %v41_v59 = vshll.u32 %v40_v56, 24  ;;  %v1080_v60 = vld [vmem:[%s1262_s3 + $0x3] sm:$0x1]  ;;  %v141_v61 = vshll.u32 %v137_v57, 16  ;;  %v138_v62 = vshll.u32 %v137_v57, 24  ;;  %v44_v63 = vshll.u32 %v40_v56, 16 }
  0x14   :  { %861 = vset.pattern.permute.xlu0 %v920_v44  ;;  %v1087_v2 = vld [vmem:[%s1262_s3 + $0x5] sm:$0x1]  ;;  %v47_v6 = vshll.u32 %v40_v56, 8  ;;  %v422_v8 = vld [vmem:[%s1262_s3 + $0x4] sm:$0x1]  ;;  %v144_v9 = vshll.u32 %v137_v57, 8 }
  0x15   :  { %87 = vperm.xlu0 %861, %v955_v1   ;;  %v328_v1 = vshll.u32 %v1080_v60, 24  ;;  %v142_v10 = vshra.s32 %v141_v61, 24  ;;  %v139_v11 = vshra.s32 %v138_v62, 24  ;;  %v45_v12 = vshra.s32 %v44_v63, 24  ;;  %v612_v29 = vld [vmem:[%s1262_s3 + $0x6] sm:$0x1] }
  0x16   :  { %v48_v18 = vshra.s32 %v47_v6, 24  ;;  %v145_v19 = vshra.s32 %v144_v9, 24  ;;  %v426_v23 = vshll.u32 %v422_v8, 16  ;;  %v331_v26 = vshll.u32 %v1080_v60, 16  ;;  %s812_s26 = sshll.u32 %s1263_s4, 4  ;;  %s813_s26 = int_to_ptr.hbm [resolvable:$true] %s812_s26 }
  0x17   :  { %839 = vmatmul.msk.f32.vlgmr.msrb.gmra.mxu0 %vm62_vm7, %v836_v45  ;;  %843 = vmatmul.msk.f32.vlgmr.msrb.gmra.mxu1 %vm62_vm7, %v840_v46  ;;  %v143_v20 = vcvt.s32.f32 %v142_v10  ;;  %v140_v21 = vcvt.s32.f32 %v139_v11  ;;  %v46_v22 = vcvt.s32.f32 %v45_v12  ;;  %v429_v35 = vshll.u32 %v422_v8, 8 }
  0x18   :  { %847 = vmatmul.msk.f32.vlgmr.msrb.gmra.mxu2 %vm62_vm7, %v844_v47  ;;  %851 = vmatmul.msk.f32.vlgmr.msrb.gmra.mxu3 %vm62_vm7, %v848_v48  ;;  %v49_v33 = vcvt.s32.f32 %v48_v18  ;;  %v146_v34 = vcvt.s32.f32 %v145_v19  ;;  %v236_v36 = vshll.u32 %v1075_v58, 16  ;;  %v427_v41 = vshra.s32 %v426_v23, 24 }
  0x19   :  { %v186_v37 = vperm.slane %v143_v20, 0  ;;  %v157_v38 = vperm.slane %v140_v21, 0  ;;  %v613_v45 = vshll.u32 %v612_v29, 24  ;;  %v616_v9 = vshll.u32 %v612_v29, 16 }
  0x1a   :  { %862 = vset.pattern.permute.xlu2 %v920_v44  ;;  %v97_v56 = vperm.slane %v49_v33, 0  ;;  %v193_v57 = vperm.slane %v146_v34, 0  ;;  %v237_v61 = vshra.s32 %v236_v36, 24  ;;  %vm101_vm12 = vcmask 1042432  }
  0x1b   :  { %183 = vperm.xlu2 %862, %v981_v15   ;;  %724 = vperm.xlu1 %859, %v849_v49  }
  0x1d   :  { %468 = vperm.xlu0 %861, %v837_v42  }
  0x23   :  { %373 = vperm.xlu2 %862, %v976_v14   ;;  %863 = vset.pattern.permute.xlu1 %v920_v44  ;;  %v332_v44 = vshra.s32 %v331_v26, 24  ;;  %v617_v26 = vshra.s32 %v616_v9, 24 }
  0x24   :  { %278 = vperm.xlu1 %863, %v950_v0  }
  0x25   :  { %865 = vset.pattern.permute.xlu0 %v917_v3  ;;  %v333_v6 = vcvt.s32.f32 %v332_v44 }
  0x26   :  { %285 = vperm.xlu0 %865, %v950_v0   ;;  %v233_v0 = vshll.u32 %v1075_v58, 24 }
  0x28   :  { %v234_v13 = vshra.s32 %v233_v0, 24 }
  0x2a   :  { %v235_v24 = vcvt.s32.f32 %v234_v13 }
  0x2b   :  { %658 = vperm.xlu2 %862, %v986_v17  }
  0x2c   :  { %563 = vperm.xlu1 %863, %v841_v39  }
  0x2e   :  { %760 = vperm.xlu0 %865, %v849_v49  }
  0x33   :  { %864 = vset.pattern.permute.xlu2 %v917_v3 }
  0x34   :  { %190 = vperm.xlu2 %864, %v981_v15   ;;  %753 = vperm.xlu1 %863, %v849_v49   ;;  %v329_v15 = vshra.s32 %v328_v1, 24  ;;  %v239_v49 = vshll.u32 %v1075_v58, 8  ;;  %v428_v1 = vcvt.s32.f32 %v427_v41 }
  0x36   :  { %v330_v27 = vcvt.s32.f32 %v329_v15  ;;  %v471_v21 = vperm.slane %v428_v1, 0 }
  0x38   :  { %v347_v46 = vperm.slane %v330_v27, 0 }
  0x3c   :  { %475 = vperm.xlu2 %864, %v837_v42   ;;  %866 = vset.pattern.permute.xlu1 %v917_v3  ;;  %v42_v3 = vshra.s32 %v41_v59, 24  ;;  %v252_v42 = vperm.slane %v235_v24, 0  ;;  %v430_v59 = vshra.s32 %v429_v35, 24  ;;  %v1112_v24 = vperm.slane %v333_v6, 0 }
  0x3d   :  { %380 = vperm.xlu1 %866, %v976_v14   ;;  %v518_v14 = vshll.u32 %v1087_v2, 24  ;;  %v521_v35 = vshll.u32 %v1087_v2, 16 }
  0x3e   :  { %v43_v16 = vcvt.s32.f32 %v42_v3 }
  0x3f   :  { %v519_v25 = vshra.s32 %v518_v14, 24  ;;  %v240_v14 = vshra.s32 %v239_v49, 24 }
  0x40   :  { %v60_v28 = vperm.slane %v43_v16, 0 }
  0x41   :  { %v520_v43 = vcvt.s32.f32 %v519_v25 }
  0x43   :  { %v1106_v3 = vperm.slane %v520_v43, 0 }
  0x44   :  { %665 = vperm.xlu2 %864, %v986_v17   ;;  %v423_v17 = vshll.u32 %v422_v8, 24  ;;  %v614_v8 = vshra.s32 %v613_v45, 24 }
  0x45   :  { %570 = vperm.xlu1 %866, %v841_v39   ;;  %v90_v39 = vperm.slane %v46_v22, 0 }
  0x46   :  { %v424_v30 = vshra.s32 %v423_v17, 24  ;;  %v619_v17 = vshll.u32 %v612_v29, 8  ;;  %v615_v25 = vcvt.s32.f32 %v614_v8  ;;  %v241_v29 = vcvt.s32.f32 %v240_v14 }
  0x48   :  { %v425_v48 = vcvt.s32.f32 %v424_v30  ;;  %v620_v34 = vshra.s32 %v619_v17, 24  ;;  %v632_v41 = vperm.slane %v615_v25, 0  ;;  %v288_v49 = vperm.slane %v241_v29, 0 }
  0x5c   :  { %v1056_v50 = vpop.permute.xlu2 %249 }
  0x5d   :  { %v253_v23 = vmul.f32 %v252_v42, %v1056_v50  ;;  %v618_v42 = vcvt.s32.f32 %v617_v26 }
  0x5f   :  { %v661_v1 = vperm.slane %v618_v42, 0 }
  0x64   :  { %v1058_v51 = vpop.permute.xlu2 %344 }
  0x6c   :  { %v1060_v52 = vpop.permute.xlu2 %534 }
  0x74   :  { %v1062_v53 = vpop.permute.xlu1 %94 }
  0x75   :  { %v1064_v54 = vpop.permute.xlu2 %183  ;;  %v98_v15 = vmul.f32 %v97_v56, %v1062_v53  ;;  %v1117_v53 = vld [vmem:[%s1262_s3 + $0x7] sm:$0x1]  ;;  %s921_s3 = smov [#allocation3]  }
  0x76   :  { %v58_v55 = vpop.permute.xlu0 %57  ;;  %v187_v62 = vmul.f32 %v186_v37, %v1064_v54  ;;  %v431_v54 = vcvt.s32.f32 %v430_v59  ;;  %v708_v43 = vshll.u32 %v1117_v53, 24  ;;  %s810_s23 = sshll.u32 %s921_s3, 4  ;;  %s811_s23 = int_to_ptr.vmem [resolvable:$true] %s810_s23 }
  0x77   :  { %v61_v47 = vmul.f32 %v60_v28, %v58_v55  ;;  %v442_v55 = vperm.slane %v425_v48, 0 }
  0x78   :  { %v478_v30 = vperm.slane %v431_v54, 0  ;;  %v709_v8 = vshra.s32 %v708_v43, 24 }
  0x7d   :  { %v155_v4 = vpop.permute.xlu1 %154  ;;  %v1089_v5 = vpop.permute.xlu2 %373 }
  0x7e   :  { %v1091_v7 = vpop.permute.xlu0 %629  ;;  %v158_v63 = vmul.f32 %v157_v38, %v155_v4  ;;  %v238_v4 = vcvt.s32.f32 %v237_v61  ;;  %v621_v61 = vcvt.s32.f32 %v620_v34 }
  0x7f   :  { %v633_v14 = vmul.f32 %v632_v41, %v1091_v7  ;;  %v334_v7 = vshll.u32 %v1080_v60, 8 }
  0x80   :  { %v281_v33 = vperm.slane %v238_v4, 0 }
  0x85   :  { %v440_v31 = vpop.permute.xlu1 %439  ;;  %v1101_v32 = vpop.permute.xlu2 %658 }
  0x86   :  { %v443_v36 = vmul.f32 %v442_v55, %v440_v31 }
  0x87   :  { %v88_v40 = vpop.permute.xlu0 %87 }
  0x88   :  { %v91_v0 = vmul.f32 %v90_v39, %v88_v40  ;;  %v1121_v40 = vmul.f32 %v347_v46, %v1058_v51 }
  0x8c   :  { %v83_v10 = vpop.f32.mrf.mxu0  ;;  %v179_v11 = vpop.f32.mrf.mxu1 }
  0x8d   :  { %v84_v12 = vadd.f32 %v83_v10, %v61_v47  ;;  %v180_v13 = vadd.f32 %v179_v11, %v158_v63  ;;  %v1108_v58 = vpop.permute.xlu1 %724 }
  0x8e   :  { %v191_v16 = vpop.permute.xlu2 %190 }
  0x8f   :  { %v92_v18 = vadd.f32 %v91_v0, %v84_v12  ;;  %v188_v19 = vadd.f32 %v187_v62, %v180_v13  ;;  %v194_v20 = vmul.f32 %v193_v57, %v191_v16  ;;  %v469_v22 = vpop.permute.xlu0 %468  ;;  %v522_v62 = vshra.s32 %v521_v35, 24 }
  0x90   :  { %v472_v38 = vmul.f32 %v471_v21, %v469_v22  ;;  %v711_v13 = vshll.u32 %v1117_v53, 16  ;;  %v662_v21 = vmul.f32 %v661_v1, %v1101_v32 }
  0x91   :  { %v99_v27 = vadd.f32 %v98_v15, %v92_v18  ;;  %v195_v28 = vadd.f32 %v194_v20, %v188_v19  ;;  %v523_v54 = vcvt.s32.f32 %v522_v62  ;;  %v668_v19 = vperm.slane %v621_v61, 0 }
  0x92   :  { %v714_v20 = vshll.u32 %v1117_v53, 8  ;;  %v712_v29 = vshra.s32 %v711_v13, 24  ;;  %v377_v61 = vmul.f32 %v1112_v24, %v1089_v5 }
  0x93   :  { %v100_v50 = vmul.f32 %v99_v27, %v99_v27  ;;  %v196_v37 = vmul.f32 %v195_v28, %v195_v28  ;;  %v274_v39 = vpop.f32.mrf.mxu2  ;;  %v369_v26 = vpop.f32.mrf.mxu3 }
  0x94   :  { %v464_v44 = vpop.f32.mrf.mxu0  ;;  %v275_v63 = vadd.f32 %v274_v39, %v253_v23  ;;  %v559_v5 = vpop.f32.mrf.mxu1 }
  0x95   :  { %v102_v45 = vsel %vm101_vm12, %v100_v50, 0.0  ;;  %v197_v47 = vsel %vm101_vm12, %v196_v37, 0.0  ;;  %v465_v48 = vadd.f32 %v464_v44, %v443_v36 }
  0x96   :  { %v103_v56 = vrot.slane %v102_v45, 4  ;;  %v198_v31 = vrot.slane %v197_v47, 4  ;;  %v476_v57 = vpop.permute.xlu2 %475  ;;  %v279_v59 = vpop.permute.xlu1 %278 }
  0x97   :  { %v473_v51 = vadd.f32 %v472_v38, %v465_v48  ;;  %v479_v46 = vmul.f32 %v478_v30, %v476_v57  ;;  %v282_v0 = vmul.f32 %v281_v33, %v279_v59  ;;  %v710_v33 = vcvt.s32.f32 %v709_v8 }
  0x98   :  { %v104_v6 = vadd.f32 %v103_v56, %v102_v45  ;;  %v199_v9 = vadd.f32 %v198_v31, %v197_v47  ;;  %v286_v10 = vpop.permute.xlu0 %285  ;;  %v715_v38 = vshra.s32 %v714_v20, 24  ;;  %v566_v45 = vperm.slane %v523_v54, 0 }
  0x99   :  { %v480_v11 = vadd.f32 %v479_v46, %v473_v51  ;;  %v283_v55 = vadd.f32 %v282_v0, %v275_v63  ;;  %v289_v12 = vmul.f32 %v288_v49, %v286_v10  ;;  %v713_v47 = vcvt.s32.f32 %v712_v29 }
  0x9a   :  { %v105_v15 = vrot.slane %v104_v6, 2  ;;  %v200_v16 = vrot.slane %v199_v9, 2  ;;  %v335_v48 = vshra.s32 %v334_v7, 24  ;;  %v716_v57 = vcvt.s32.f32 %v715_v38 }
  0x9b   :  { %v481_v4 = vmul.f32 %v480_v11, %v480_v11  ;;  %v290_v17 = vadd.f32 %v289_v12, %v283_v55  ;;  %v654_v18 = vpop.f32.mrf.mxu2  ;;  %v538_v59 = vmul.f32 %v1106_v3, %v1060_v52  ;;  %v727_v63 = vperm.slane %v710_v33, 0 }
  0x9c   :  { %v106_v22 = vadd.f32 %v105_v15, %v104_v6  ;;  %v201_v23 = vadd.f32 %v200_v16, %v199_v9  ;;  %v655_v25 = vadd.f32 %v654_v18, %v633_v14  ;;  %v370_v46 = vadd.f32 %v369_v26, %v1121_v40  ;;  %v749_v9 = vpop.f32.mrf.mxu3 }
  0x9d   :  { %v482_v27 = vsel %vm101_vm12, %v481_v4, 0.0  ;;  %v291_v28 = vmul.f32 %v290_v17, %v290_v17  ;;  %v756_v0 = vperm.slane %v713_v47, 0  ;;  %v336_v1 = vcvt.s32.f32 %v335_v48 }
  0x9e   :  { %v107_v30 = vrot.slane %v106_v22, 1  ;;  %v202_v34 = vrot.slane %v201_v23, 1  ;;  %v483_v35 = vrot.slane %v482_v27, 4  ;;  %v666_v36 = vpop.permute.xlu2 %665  ;;  %v564_v50 = vpop.permute.xlu1 %563  ;;  %v663_v37 = vadd.f32 %v662_v21, %v655_v25 }
  0x9f   :  { %v292_v53 = vsel %vm101_vm12, %v291_v28, 0.0  ;;  %v669_v32 = vmul.f32 %v668_v19, %v666_v36  ;;  %v567_v10 = vmul.f32 %v566_v45, %v564_v50  ;;  %v763_v11 = vperm.slane %v716_v57, 0 }
  0xa0   :  { %v108_v39 = vadd.f32 %v107_v30, %v106_v22  ;;  %v203_v41 = vadd.f32 %v202_v34, %v201_v23  ;;  %v484_v42 = vadd.f32 %v483_v35, %v482_v27  ;;  %v293_v43 = vrot.slane %v292_v53, 4  ;;  %v761_v14 = vpop.permute.xlu0 %760 }
  0xa1   :  { %v670_v44 = vadd.f32 %v669_v32, %v663_v37  ;;  %v524_v55 = vshll.u32 %v1087_v2, 8  ;;  %v728_v40 = vmul.f32 %v727_v63, %v1108_v58  ;;  %v1159_v15 = vadd.f32 %v377_v61, %v370_v46 }
  0xa2   :  { %vm109_vm13 = vcmp.ge.f32.partialorder %v108_v39, 0.01  ;;  %vm110_vm14 = vcmp.le.f32.partialorder %v108_v39, 4.0  ;;  %vm204_vm15 = vcmp.ge.f32.partialorder %v203_v41, 0.01  ;;  %vm205_vm0 = vcmp.le.f32.partialorder %v203_v41, 4.0 }
  0xa3   :  { %vm1133_vm1 = vmand %vm109_vm13, %vm110_vm14  ;;  %v485_v49 = vrot.slane %v484_v42, 2  ;;  %v294_v56 = vadd.f32 %v293_v43, %v292_v53  ;;  %v671_v31 = vmul.f32 %v670_v44, %v670_v44  ;;  %v560_v16 = vadd.f32 %v559_v5, %v538_v59 }
  0xa4   :  { %v1143_v62 = vsel %vm1133_vm1, %v108_v39, 1.0  ;;  %vm1145_vm2 = vmand %vm204_vm15, %vm205_vm0  ;;  %v750_v19 = vadd.f32 %v749_v9, %v728_v40  ;;  %v383_v20 = vperm.slane %v336_v1, 0  ;;  %v764_v25 = vmul.f32 %v763_v11, %v761_v14 }
  0xa5   :  { %875 = vrcp.f32 %v1143_v62  ;;  %v1153_v52 = vsel %vm1145_vm2, %v203_v41, 1.0  ;;  %v486_v3 = vadd.f32 %v485_v49, %v484_v42  ;;  %v295_v24 = vrot.slane %v294_v56, 2 }
  0xa6   :  { %v672_v6 = vsel %vm101_vm12, %v671_v31, 0.0  ;;  %v754_v8 = vpop.permute.xlu1 %753  ;;  %877 = vrcp.f32 %v1153_v52  ;;  %v1161_v23 = vadd.f32 %v567_v10, %v560_v16  ;;  %v525_v2 = vshra.s32 %v524_v55, 24  ;;  %v129_v31 = vld [vmem:[#allocation2] sm:$0x1] }
  0xa7   :  { %v487_v12 = vrot.slane %v486_v3, 1  ;;  %v296_v13 = vadd.f32 %v295_v24, %v294_v56  ;;  %v673_v54 = vrot.slane %v672_v6, 4  ;;  %v757_v4 = vmul.f32 %v756_v0, %v754_v8 }
  0xa8   :  { %vm118_vm5 = vweird.f32 %v1143_v62  ;;  %v122_v28 = vand.u32 2147483647, %v1143_v62  ;;  %v124_v33 = vand.u32 2147483648, %v1143_v62  ;;  %v217_v41 = vand.u32 2147483647, %v1153_v52 }
  0xa9   :  { %v488_v17 = vadd.f32 %v487_v12, %v486_v3  ;;  %v297_v18 = vrot.slane %v296_v13, 1  ;;  %v674_v22 = vadd.f32 %v673_v54, %v672_v6  ;;  %v758_v26 = vadd.f32 %v757_v4, %v750_v19  ;;  %v224_v3 = vld [vmem:[#allocation2 + $0x1] sm:$0x1] }
  0xaa   :  { %v219_v42 = vand.u32 2147483648, %v1153_v52  ;;  %vm123_vm14 = vcmp.eq.f32.partialorder %v122_v28, 8.507059e+37  ;;  %v125_v48 = vor.u32 1.1754944e-38, %v124_v33  ;;  %vm213_vm15 = vweird.f32 %v1153_v52 }
  0xab   :  { %v876_v21 = vpop.eup %875  ;;  %vm489_vm3 = vcmp.ge.f32.partialorder %v488_v17, 0.01  ;;  %vm490_vm4 = vcmp.le.f32.partialorder %v488_v17, 4.0  ;;  %v298_v29 = vadd.f32 %v297_v18, %v296_v13  ;;  %v675_v7 = vrot.slane %v674_v22, 2 }
  0xac   :  { %v114_v58 = vmul.f32 %v876_v21, %v1143_v62  ;;  %v878_v27 = vpop.eup %877  ;;  %vm119_vm6 = vweird.f32 %v876_v21  ;;  %vm1168_vm7 = vmand %vm489_vm3, %vm490_vm4  ;;  %v765_v39 = vadd.f32 %v764_v25, %v758_v26  ;;  %v526_v49 = vcvt.s32.f32 %v525_v2 }
  0xad   :  { %v209_v34 = vmul.f32 %v878_v27, %v1153_v52  ;;  %v1174_v36 = vsel %vm1168_vm7, %v488_v17, 1.0  ;;  %vm299_vm8 = vcmp.ge.f32.partialorder %v298_v29, 0.01  ;;  %vm300_vm9 = vcmp.le.f32.partialorder %v298_v29, 4.0  ;;  %vm120_vm13 = vmor %vm118_vm5, %vm119_vm6 }
  0xae   :  { %v115_v30 = vsub.f32 1.0, %v114_v58  ;;  %v676_v50 = vadd.f32 %v675_v7, %v674_v22  ;;  %879 = vrcp.f32 %v1174_v36  ;;  %vm1177_vm10 = vmand %vm299_vm8, %vm300_vm9  ;;  %vm214_vm11 = vweird.f32 %v878_v27  ;;  %v509_v7 = vld [vmem:[#allocation2 + $0x4] sm:$0x1] }
  0xaf   :  { %v381_v53 = vpop.permute.xlu1 %380  ;;  %v210_v32 = vsub.f32 1.0, %v209_v34  ;;  %v1185_v43 = vsel %vm1177_vm10, %v298_v29, 1.0  ;;  %v766_v61 = vmul.f32 %v765_v39, %v765_v39  ;;  %vm215_vm0 = vmor %vm213_vm15, %vm214_vm11  ;;  %vm218_vm3 = vcmp.eq.f32.partialorder %v217_v41, 8.507059e+37  ;;  %v319_v41 = vld [vmem:[#allocation2 + $0x2] sm:$0x1] }
  0xb0   :  { %v116_v37 = vmul.f32 %v876_v21, %v115_v30  ;;  %v677_v44 = vrot.slane %v676_v50, 1  ;;  %881 = vrcp.f32 %v1185_v43  ;;  %v220_v46 = vor.u32 1.1754944e-38, %v219_v42 }
  0xb1   :  { %v211_v47 = vmul.f32 %v878_v27, %v210_v32  ;;  %v384_v0 = vmul.f32 %v383_v20, %v381_v53  ;;  %v573_v9 = vperm.slane %v526_v49, 0  ;;  %v767_v55 = vsel %vm101_vm12, %v766_v61, 0.0 }
  0xb2   :  { %v117_v45 = vadd.f32 %v876_v21, %v116_v37  ;;  %v678_v59 = vadd.f32 %v677_v44, %v676_v50  ;;  %v502_v51 = vand.u32 2147483647, %v1174_v36  ;;  %v504_v54 = vand.u32 2147483648, %v1174_v36 }
  0xb3   :  { %v212_v57 = vadd.f32 %v878_v27, %v211_v47  ;;  %v385_v40 = vadd.f32 %v384_v0, %v1159_v15  ;;  %v768_v18 = vrot.slane %v767_v55, 4  ;;  %v312_v19 = vand.u32 2147483647, %v1185_v43 }
  0xb4   :  { %v121_v56 = vsel %vm120_vm13, %v876_v21, %v117_v45  ;;  %v880_v1 = vpop.eup %879  ;;  %vm679_vm4 = vcmp.ge.f32.partialorder %v678_v59, 0.01  ;;  %vm680_vm5 = vcmp.le.f32.partialorder %v678_v59, 4.0  ;;  %v314_v20 = vand.u32 2147483648, %v1185_v43 }
  0xb5   :  { %v126_v63 = vsel %vm123_vm14, %v125_v48, %v121_v56  ;;  %v216_v5 = vsel %vm215_vm0, %v878_v27, %v212_v57  ;;  %v494_v6 = vmul.f32 %v880_v1, %v1174_v36  ;;  %vm1195_vm6 = vmand %vm679_vm4, %vm680_vm5  ;;  %vm499_vm8 = vweird.f32 %v880_v1 }
  0xb6   :  { %v128_v62 = vsel %vm1133_vm1, %v126_v63, 0.0  ;;  %v221_v24 = vsel %vm218_vm3, %v220_v46, %v216_v5  ;;  %v882_v10 = vpop.eup %881  ;;  %v1203_v60 = vsel %vm1195_vm6, %v678_v59, 1.0  ;;  %vm498_vm1 = vweird.f32 %v1174_v36 }
  0xb7   :  { %v130_v52 = vadd.f32 %v129_v31, %v128_v62  ;;  %v223_v11 = vsel %vm1145_vm2, %v221_v24, 0.0  ;;  %v495_v13 = vsub.f32 1.0, %v494_v6  ;;  %v304_v14 = vmul.f32 %v882_v10, %v1185_v43  ;;  %v571_v16 = vpop.permute.xlu1 %570  ;;  %vm500_vm9 = vmor %vm498_vm1, %vm499_vm8  ;;  %v699_v24 = vld [vmem:[#allocation2 + $0x6] sm:$0x1] }
  0xb8   :  { %v225_v12 = vadd.f32 %v224_v3, %v223_v11  ;;  %883 = vrcp.f32 %v1203_v60  ;;  %v386_v15 = vmul.f32 %v385_v40, %v385_v40  ;;  %vm309_vm2 = vweird.f32 %v882_v10 }
  0xb9   :  { %131 = vst [vmem:[#allocation2] sm:$0x1] %v130_v52  ;;  %v496_v4 = vmul.f32 %v880_v1, %v495_v13  ;;  %v305_v17 = vsub.f32 1.0, %v304_v14  ;;  %v574_v21 = vmul.f32 %v573_v9, %v571_v16  ;;  %v769_v2 = vadd.f32 %v768_v18, %v767_v55 }
  0xba   :  { %226 = vst [vmem:[#allocation2 + $0x1] sm:$0x1] %v225_v12  ;;  %v387_v58 = vsel %vm101_vm12, %v386_v15, 0.0  ;;  %v505_v26 = vor.u32 1.1754944e-38, %v504_v54  ;;  %vm308_vm11 = vweird.f32 %v1185_v43  ;;  %vm503_vm13 = vcmp.eq.f32.partialorder %v502_v51, 8.507059e+37 }
  0xbb   :  { %v497_v22 = vadd.f32 %v880_v1, %v496_v4  ;;  %v306_v25 = vmul.f32 %v882_v10, %v305_v17  ;;  %v388_v27 = vrot.slane %v387_v58, 4  ;;  %v575_v28 = vadd.f32 %v574_v21, %v1161_v23  ;;  %vm310_vm14 = vmor %vm308_vm11, %vm309_vm2 }
  0xbc   :  { %v770_v33 = vrot.slane %v769_v2, 2  ;;  %v315_v53 = vor.u32 1.1754944e-38, %v314_v20  ;;  %vm313_vm15 = vcmp.eq.f32.partialorder %v312_v19, 8.507059e+37  ;;  %v694_v49 = vand.u32 2147483648, %v1203_v60 }
  0xbd   :  { %v501_v29 = vsel %vm500_vm9, %v880_v1, %v497_v22  ;;  %v307_v30 = vadd.f32 %v882_v10, %v306_v25  ;;  %v389_v37 = vadd.f32 %v388_v27, %v387_v58  ;;  %v576_v32 = vmul.f32 %v575_v28, %v575_v28  ;;  %v794_v28 = vld [vmem:[#allocation2 + $0x7] sm:$0x1] }
  0xbe   :  { %v884_v34 = vpop.eup %883  ;;  %v506_v50 = vsel %vm503_vm13, %v505_v26, %v501_v29  ;;  %v771_v44 = vadd.f32 %v770_v33, %v769_v2  ;;  %v692_v63 = vand.u32 2147483647, %v1203_v60  ;;  %v695_v62 = vor.u32 1.1754944e-38, %v694_v49  ;;  %v604_v49 = vld [vmem:[#allocation2 + $0x5] sm:$0x1] }
  0xbf   :  { %v508_v36 = vsel %vm1168_vm7, %v506_v50, 0.0  ;;  %v311_v39 = vsel %vm310_vm14, %v882_v10, %v307_v30  ;;  %v684_v23 = vmul.f32 %v884_v34, %v1203_v60  ;;  %v390_v45 = vrot.slane %v389_v37, 2 }
  0xc0   :  { %v510_v42 = vadd.f32 %v509_v7, %v508_v36  ;;  %v316_v43 = vsel %vm313_vm15, %v315_v53, %v311_v39  ;;  %v577_v56 = vsel %vm101_vm12, %v576_v32, 0.0  ;;  %v772_v31 = vrot.slane %v771_v44, 1  ;;  %v414_v53 = vld [vmem:[#allocation2 + $0x3] sm:$0x1] }
  0xc1   :  { %v318_v47 = vsel %vm1177_vm10, %v316_v43, 0.0  ;;  %v685_v48 = vsub.f32 1.0, %v684_v23  ;;  %v391_v57 = vadd.f32 %v390_v45, %v389_v37  ;;  %v578_v59 = vrot.slane %v577_v56, 4 }
  0xc2   :  { %511 = vst [vmem:[#allocation2 + $0x4] sm:$0x1] %v510_v42  ;;  %v320_v35 = vadd.f32 %v319_v41, %v318_v47  ;;  %vm689_vm7 = vweird.f32 %v884_v34  ;;  %v773_v46 = vadd.f32 %v772_v31, %v771_v44  ;;  %vm688_vm10 = vweird.f32 %v1203_v60 }
  0xc3   :  { %v686_v61 = vmul.f32 %v884_v34, %v685_v48  ;;  %v392_v0 = vrot.slane %v391_v57, 1  ;;  %v579_v1 = vadd.f32 %v578_v59, %v577_v56  ;;  %vm690_vm0 = vmor %vm688_vm10, %vm689_vm7  ;;  %vm693_vm4 = vcmp.eq.f32.partialorder %v692_v63, 8.507059e+37 }
  0xc4   :  { %321 = vst [vmem:[#allocation2 + $0x2] sm:$0x1] %v320_v35  ;;  %vm774_vm3 = vcmp.ge.f32.partialorder %v773_v46, 0.01  ;;  %vm775_vm12 = vcmp.le.f32.partialorder %v773_v46, 4.0 }
  0xc5   :  { %v687_v38 = vadd.f32 %v884_v34, %v686_v61  ;;  %v393_v5 = vadd.f32 %v392_v0, %v391_v57  ;;  %v580_v3 = vrot.slane %v579_v1, 2  ;;  %vm1230_vm5 = vmand %vm774_vm3, %vm775_vm12 }
  0xc6   :  { %v777_v10 = vsel %vm1230_vm5, %v773_v46, 1.0 }
  0xc7   :  { %v691_v52 = vsel %vm690_vm0, %v884_v34, %v687_v38  ;;  %vm394_vm1 = vcmp.ge.f32.partialorder %v393_v5, 0.01  ;;  %vm395_vm8 = vcmp.le.f32.partialorder %v393_v5, 4.0  ;;  %885 = vrcp.f32 %v777_v10 }
  0xc8   :  { %v696_v9 = vsel %vm693_vm4, %v695_v62, %v691_v52  ;;  %vm1238_vm2 = vmand %vm394_vm1, %vm395_vm8  ;;  %v581_v12 = vadd.f32 %v580_v3, %v579_v1  ;;  %v787_v18 = vand.u32 2147483647, %v777_v10  ;;  %v789_v15 = vand.u32 2147483648, %v777_v10 }
  0xc9   :  { %v698_v11 = vsel %vm1195_vm6, %v696_v9, 0.0  ;;  %v397_v40 = vsel %vm1238_vm2, %v393_v5, 1.0  ;;  %vm783_vm14 = vweird.f32 %v777_v10 }
  0xca   :  { %v700_v55 = vadd.f32 %v699_v24, %v698_v11  ;;  %887 = vrcp.f32 %v397_v40  ;;  %v582_v13 = vrot.slane %v581_v12, 1  ;;  %v409_v22 = vand.u32 2147483648, %v397_v40 }
  0xcb   :  { %v407_v58 = vand.u32 2147483647, %v397_v40  ;;  %v790_v26 = vor.u32 1.1754944e-38, %v789_v15  ;;  %vm788_vm10 = vcmp.eq.f32.partialorder %v787_v18, 8.507059e+37  ;;  %vm403_vm0 = vweird.f32 %v397_v40 }
  0xcc   :  { %701 = vst [vmem:[#allocation2 + $0x6] sm:$0x1] %v700_v55  ;;  %v583_v14 = vadd.f32 %v582_v13, %v581_v12  ;;  %v410_v30 = vor.u32 1.1754944e-38, %v409_v22 }
  0xcd   :  { %v886_v16 = vpop.eup %885  ;;  %vm408_vm12 = vcmp.eq.f32.partialorder %v407_v58, 8.507059e+37 }
  0xce   :  { %v779_v51 = vmul.f32 %v886_v16, %v777_v10  ;;  %vm584_vm9 = vcmp.ge.f32.partialorder %v583_v14, 0.01  ;;  %vm585_vm11 = vcmp.le.f32.partialorder %v583_v14, 4.0  ;;  %vm784_vm13 = vweird.f32 %v886_v16 }
  0xcf   :  { %vm1244_vm6 = vmand %vm584_vm9, %vm585_vm11 }
  0xd0   :  { %v888_v8 = vpop.eup %887  ;;  %v780_v54 = vsub.f32 1.0, %v779_v51  ;;  %v587_v19 = vsel %vm1244_vm6, %v583_v14, 1.0  ;;  %vm785_vm7 = vmor %vm783_vm14, %vm784_vm13 }
  0xd1   :  { %v399_v4 = vmul.f32 %v888_v8, %v397_v40  ;;  %889 = vrcp.f32 %v587_v19  ;;  %vm404_vm15 = vweird.f32 %v888_v8  ;;  %v599_v42 = vand.u32 2147483648, %v587_v19 }
  0xd2   :  { %v781_v20 = vmul.f32 %v886_v16, %v780_v54  ;;  %vm405_vm3 = vmor %vm403_vm0, %vm404_vm15  ;;  %v597_v44 = vand.u32 2147483647, %v587_v19  ;;  %vm593_vm1 = vweird.f32 %v587_v19 }
  0xd3   :  { %v400_v21 = vsub.f32 1.0, %v399_v4  ;;  %v600_v47 = vor.u32 1.1754944e-38, %v599_v42 }
  0xd4   :  { %v782_v25 = vadd.f32 %v886_v16, %v781_v20  ;;  %vm598_vm8 = vcmp.eq.f32.partialorder %v597_v44, 8.507059e+37 }
  0xd5   :  { %v401_v2 = vmul.f32 %v888_v8, %v400_v21 }
  0xd6   :  { %v786_v27 = vsel %vm785_vm7, %v886_v16, %v782_v25 }
  0xd7   :  { %v402_v29 = vadd.f32 %v888_v8, %v401_v2  ;;  %v791_v7 = vsel %vm788_vm10, %v790_v26, %v786_v27  ;;  %v890_v33 = vpop.eup %889 }
  0xd8   :  { %v793_v34 = vsel %vm1230_vm5, %v791_v7, 0.0  ;;  %v589_v36 = vmul.f32 %v890_v33, %v587_v19  ;;  %vm594_vm4 = vweird.f32 %v890_v33 }
  0xd9   :  { %v406_v50 = vsel %vm405_vm3, %v888_v8, %v402_v29  ;;  %v795_v37 = vadd.f32 %v794_v28, %v793_v34  ;;  %vm595_vm5 = vmor %vm593_vm1, %vm594_vm4 }
  0xda   :  { %v411_v32 = vsel %vm408_vm12, %v410_v30, %v406_v50  ;;  %v590_v23 = vsub.f32 1.0, %v589_v36 }
  0xdb   :  { %v413_v39 = vsel %vm1238_vm2, %v411_v32, 0.0  ;;  %796 = vst [vmem:[#allocation2 + $0x7] sm:$0x1] %v795_v37 }
  0xdc   :  { %v415_v41 = vadd.f32 %v414_v53, %v413_v39  ;;  %v591_v43 = vmul.f32 %v890_v33, %v590_v23 }
  0xde   :  { %416 = vst [vmem:[#allocation2 + $0x3] sm:$0x1] %v415_v41  ;;  %v592_v45 = vadd.f32 %v890_v33, %v591_v43 }
  0xe0   :  { %v596_v48 = vsel %vm595_vm5, %v890_v33, %v592_v45 }
  0xe1   :  { %v601_v56 = vsel %vm598_vm8, %v600_v47, %v596_v48 }
  0xe2   :  { %v603_v35 = vsel %vm1244_vm6, %v601_v56, 0.0 }
  0xe3   :  { %v605_v31 = vadd.f32 %v604_v49, %v603_v35 }
  0xe5   :  { %606 = vst [vmem:[#allocation2 + $0x5] sm:$0x1] %v605_v31 }
  0xec   :  { %v800_v57 = vld [vmem:[#allocation2] sm:$0xff] }
  0xed   :  { %801 = vadd.xlane.f32.xlu1 %v800_v57 }
 0x160   :  { %v802_v59 = vpop.xlane.xlu1 %801 }
 0x161   :  { %v803_v61 = vmul.f32 0.5, %v802_v59 }
 0x163   :  { %804 = vst [vmem:[#allocation3] sm:$0xff] %v803_v61 }
 0x164   :  { %815 = dma.vmem_to_hbm [thread:$0]  %s811_s23, 128, %s813_s26, [#allocation4]  }
 0x165   :  { %915 = dma.done.wait [#allocation4], 128  }
 0x166   :  { %916 = vsyncadd [#allocation4], 4294967168 }
 0x167   :  { %820 = vsyncpa [#allocation4], 1 }

</bundles_post_ra>
